<compile_context>
chip_gen: v6e
topology: v6e:2x2x1
jax: 0.10.0
libtpu: 0.0.40
codegen_flags: <defaults>
</compile_context>

<pallas_src>
import functools

import jax
import jax.numpy as jnp
from jax.experimental import pallas as pl
from jax.experimental.pallas import tpu as pltpu


def adapter_kernel(x_ref, w1_ref, b1_ref, wc_ref, bc_ref, w2_ref, b2_ref,
                   o_ref, *, T, K):
    pad = K // 2
    x = x_ref[...]                                   # (Rblk, C), f32
    rblk = x.shape[0]

    # fc1 on the MXU: bf16 inputs, f32 accumulation, then bias (f32 VPU).
    h = jnp.dot(x.astype(jnp.bfloat16), w1_ref[...],
                preferred_element_type=jnp.float32)
    h = h + b1_ref[...]                              # (Rblk, Ca), f32

    # Depthwise Conv1d along time, in registers: K-1 sublane rolls + a narrow
    # (Rblk, 1) mask that zeroes rows that would read across the zero pad or
    # across a batch boundary inside the multi-batch block (rblk = Bblk*T so
    # row r belongs to timestep r % T of its batch element).
    wc = wc_ref[...]                                 # (K, Ca), f32
    t_idx = jax.lax.broadcasted_iota(jnp.int32, (rblk, 1), 0) % T
    y = h * wc[pad:pad + 1, :]                       # center tap, no roll/mask
    for k in range(K):                               # K is tiny & static -> unrolled
        d = k - pad
        if d == 0:
            continue
        tap = wc[k:k + 1, :]                         # (1, Ca)
        rolled = pltpu.roll(h, shift=(-d) % rblk, axis=0)  # rolled[r] = h[r + d]
        valid = jnp.logical_and(t_idx + d >= 0, t_idx + d < T)  # (Rblk, 1)
        y = y + jnp.where(valid, rolled, 0.0) * tap
    y = y + bc_ref[...]

    # fc2 on the MXU + bias + residual (residual kept in f32).
    out = jnp.dot(y.astype(jnp.bfloat16), w2_ref[...],
                  preferred_element_type=jnp.float32)
    o_ref[...] = (out + b2_ref[...] + x).astype(o_ref.dtype)


def adapter_forward(x, params, *, T, K, target_block_rows=256):
    BT, C = x.shape
    assert BT % T == 0
    B = BT // T
    Ca = params["w1"].shape[1]
    # TODO(synk): PyTorch Conv1d with even kernel_size + padding=K//2 emits T+1
    # timesteps (the original module would itself fail there); odd K only.
    assert K % 2 == 1, "faithful port requires odd kernel_size"

    # Pick how many batch elements share one grid step (big M per step, but
    # keep >= 2 grid steps so both v7x TensorCores are fed).
    bblk = max(1, min(B, target_block_rows // T))
    while B % bblk != 0:
        bblk -= 1
    if B // bblk < 2 and B > 1:
        bblk = max(1, bblk // 2)
        while B % bblk != 0:
            bblk -= 1
    rblk = bblk * T
    assert rblk % 8 == 0 or rblk == BT, "block rows must be sublane aligned"
    grid = (B // bblk,)

    kernel = functools.partial(adapter_kernel, T=T, K=K)
    full = lambda g: (0, 0)

    flops = 4 * BT * C * Ca + 2 * BT * Ca * K
    bytes_accessed = (2 * BT * C * 4                       # x in + out (f32)
                      + params["w1"].nbytes + params["w2"].nbytes
                      + params["wc"].nbytes + params["b1"].nbytes
                      + params["bc"].nbytes + params["b2"].nbytes)

    return pl.pallas_call(
        kernel,
        out_shape=jax.ShapeDtypeStruct((BT, C), x.dtype),
        grid_spec=pltpu.PrefetchScalarGridSpec(
            num_scalar_prefetch=0,
            grid=grid,
            in_specs=[
                pl.BlockSpec((rblk, C), lambda g: (g, 0)),  # x slab (Bblk batches)
                pl.BlockSpec((C, Ca), full),                # fc1 weight (bf16)
                pl.BlockSpec((1, Ca), full),                # fc1 bias
                pl.BlockSpec((K, Ca), full),                # depthwise conv weight
                pl.BlockSpec((1, Ca), full),                # conv bias
                pl.BlockSpec((Ca, C), full),                # fc2 weight (bf16)
                pl.BlockSpec((1, C), full),                 # fc2 bias
            ],
            out_specs=pl.BlockSpec((rblk, C), lambda g: (g, 0)),
        ),
        compiler_params=pltpu.CompilerParams(
            dimension_semantics=("parallel",)),
        cost_estimate=pl.CostEstimate(flops=flops, transcendentals=0,
                                      bytes_accessed=bytes_accessed),
    )(x, params["w1"], params["b1"], params["wc"], params["bc"],
      params["w2"], params["b2"])


def reference(x, params, *, T, K):
    """Pure-JAX reference mirroring the PyTorch forward (same bf16 matmul casts)."""
    BT, C = x.shape
    B = BT // T
    Ca = params["w1"].shape[1]
    pad = K // 2
    h = jnp.dot(x.astype(jnp.bfloat16), params["w1"],
                preferred_element_type=jnp.float32) + params["b1"]
    h = h.reshape(B, T, Ca)
    hp = jnp.pad(h, ((0, 0), (pad, pad), (0, 0)))
    y = sum(hp[:, k:k + T, :] * params["wc"][k, :] for k in range(K))
    y = (y + params["bc"]).reshape(BT, Ca)
    return (jnp.dot(y.astype(jnp.bfloat16), params["w2"],
                    preferred_element_type=jnp.float32)
            + params["b2"] + x)


def make_params(key, in_channels, adapter_channels, kernel_size):
    k1, k2, k3, k4, k5, k6 = jax.random.split(key, 6)
    # PyTorch shapes: fc1.weight (Ca, C), conv.weight (Ca, 1, K), fc2.weight
    # (C, Ca).  Stored pre-transposed for row-major in-kernel matmuls; matmul
    # weights kept in bf16, conv/bias kept f32 (fast elementwise path on v5e).
    # NOTE: the PyTorch __init__ zero-inits conv weight/bias and fc biases; we
    # use small non-zero values so every path is exercised by the check.
    w1 = (jax.random.normal(k1, (in_channels, adapter_channels), jnp.float32)
          * 0.05).astype(jnp.bfloat16)
    w2 = (jax.random.normal(k2, (adapter_channels, in_channels), jnp.float32)
          * 0.05).astype(jnp.bfloat16)
    wc = jax.random.normal(k3, (kernel_size, adapter_channels), jnp.float32) * 0.1
    b1 = jax.random.normal(k4, (1, adapter_channels), jnp.float32) * 0.01
    bc = jax.random.normal(k5, (1, adapter_channels), jnp.float32) * 0.01
    b2 = jax.random.normal(k6, (1, in_channels), jnp.float32) * 0.01
    return {"w1": w1, "b1": b1, "wc": wc, "bc": bc, "w2": w2, "b2": b2}


if __name__ == "__main__":
    # Small, lane-dense, module-consistent shapes:
    #   B=64, T=8  -> 512 rows total, 256 rows per grid step, grid=(2,)
    #   in_channels = adapter_channels = 128 (full 128-lane vregs), K=3.
    B, T = 64, 8
    in_channels, adapter_channels, kernel_size = 128, 128, 3

    key = jax.random.PRNGKey(0)
    kx, kp = jax.random.split(key)
    x = jax.random.normal(kx, (B * T, in_channels), jnp.float32)
    params = make_params(kp, in_channels, adapter_channels, kernel_size)

    out = adapter_forward(x, params, T=T, K=kernel_size)
    out = jax.block_until_ready(out)

    ref = reference(x, params, T=T, K=kernel_size)
    assert out.shape == (B * T, in_channels)
    assert jnp.allclose(out, ref, atol=2e-3, rtol=2e-3), "mismatch vs reference"

    print("KERNEL_OK")
</pallas_src>

<mosaic_0001>
module attributes {stable_mosaic.version = 11 : i64} {
  func.func @adapter_kernel(%arg0: i32, %arg1: memref<256x128xf32, #tpu.memory_space<vmem>>, %arg2: memref<128x128xbf16, #tpu.memory_space<vmem>>, %arg3: memref<1x128xf32, #tpu.memory_space<vmem>>, %arg4: memref<3x128xf32, #tpu.memory_space<vmem>>, %arg5: memref<1x128xf32, #tpu.memory_space<vmem>>, %arg6: memref<128x128xbf16, #tpu.memory_space<vmem>>, %arg7: memref<1x128xf32, #tpu.memory_space<vmem>>, %arg8: memref<256x128xf32, #tpu.memory_space<vmem>>) attributes {dimension_semantics = [#tpu.dimension_semantics<parallel>], iteration_bounds = array<i64: 2>, scalar_prefetch = 0 : i64, scratch_operands = 0 : i64, tpu.core_type = #tpu.core_type<tc>, window_params = [{transform_indices = @transform_0, window_bounds = array<i64: 256, 128>}, {pipeline_mode = #tpu.pipeline_mode<synchronous>, transform_indices = @transform_1, window_bounds = array<i64: 128, 128>}, {pipeline_mode = #tpu.pipeline_mode<synchronous>, transform_indices = @transform_2, window_bounds = array<i64: 1, 128>}, {pipeline_mode = #tpu.pipeline_mode<synchronous>, transform_indices = @transform_3, window_bounds = array<i64: 3, 128>}, {pipeline_mode = #tpu.pipeline_mode<synchronous>, transform_indices = @transform_4, window_bounds = array<i64: 1, 128>}, {pipeline_mode = #tpu.pipeline_mode<synchronous>, transform_indices = @transform_5, window_bounds = array<i64: 128, 128>}, {pipeline_mode = #tpu.pipeline_mode<synchronous>, transform_indices = @transform_6, window_bounds = array<i64: 1, 128>}, {transform_indices = @transform_7, window_bounds = array<i64: 256, 128>}]} {
    %c0 = arith.constant 0 : index
    %c0_0 = arith.constant 0 : index
    %0 = vector.load %arg1[%c0, %c0_0] : memref<256x128xf32, #tpu.memory_space<vmem>>, vector<256x128xf32>
    %1 = arith.truncf %0 : vector<256x128xf32> to vector<256x128xbf16>
    %c0_1 = arith.constant 0 : index
    %c0_2 = arith.constant 0 : index
    %2 = vector.load %arg2[%c0_1, %c0_2] : memref<128x128xbf16, #tpu.memory_space<vmem>>, vector<128x128xbf16>
    %cst = arith.constant dense<0.000000e+00> : vector<256x128xf32>
    %3 = tpu.matmul %1, %2, %cst {dimension_numbers = #tpu.dot_dimension_numbers<[1], [0], [0], [1], [0, 0, 1, 1], [], []>} : vector<256x128xbf16>, vector<128x128xbf16>, vector<256x128xf32> -> vector<256x128xf32>
    %c0_3 = arith.constant 0 : index
    %c0_4 = arith.constant 0 : index
    %4 = vector.load %arg3[%c0_3, %c0_4] : memref<1x128xf32, #tpu.memory_space<vmem>>, vector<1x128xf32>
    %5 = vector.broadcast %4 : vector<1x128xf32> to vector<256x128xf32>
    %6 = arith.addf %3, %5 : vector<256x128xf32>
    %c0_5 = arith.constant 0 : index
    %c0_6 = arith.constant 0 : index
    %7 = vector.load %arg4[%c0_5, %c0_6] : memref<3x128xf32, #tpu.memory_space<vmem>>, vector<3x128xf32>
    %8 = tpu.iota {dimensions = array<i32: 0>} : vector<256x1xi32>
    %c8_i32 = arith.constant 8 : i32
    %c0_i32 = arith.constant 0 : i32
    %9 = arith.cmpi eq, %c8_i32, %c0_i32 : i32
    %c1_i32 = arith.constant 1 : i32
    %10 = arith.select %9, %c1_i32, %c8_i32 : i32
    %11 = vector.broadcast %10 : i32 to vector<256x1xi32>
    %12 = arith.remsi %8, %11 : vector<256x1xi32>
    %c0_i32_7 = arith.constant 0 : i32
    %13 = vector.broadcast %c0_i32_7 : i32 to vector<256x1xi32>
    %14 = arith.cmpi ne, %12, %13 : vector<256x1xi32>
    %c0_i32_8 = arith.constant 0 : i32
    %15 = vector.broadcast %c0_i32_8 : i32 to vector<256x1xi32>
    %16 = arith.cmpi slt, %12, %15 : vector<256x1xi32>
    %c0_i32_9 = arith.constant 0 : i32
    %17 = arith.cmpi slt, %10, %c0_i32_9 : i32
    %18 = vector.broadcast %17 : i1 to vector<256x1xi1>
    %19 = vector.broadcast %18 : vector<256x1xi1> to vector<256x1xi1>
    %20 = arith.xori %16, %19 : vector<256x1xi1>
    %21 = arith.andi %20, %14 : vector<256x1xi1>
    %22 = vector.broadcast %10 : i32 to vector<256x1xi32>
    %23 = arith.addi %12, %22 : vector<256x1xi32>
    %24 = arith.select %21, %23, %12 : vector<256x1xi1>, vector<256x1xi32>
    %25 = vector.extract_strided_slice %7 {offsets = [1, 0], sizes = [1, 128], strides = [1, 1]} : vector<3x128xf32> to vector<1x128xf32>
    %26 = vector.broadcast %25 : vector<1x128xf32> to vector<256x128xf32>
    %27 = arith.mulf %6, %26 : vector<256x128xf32>
    %28 = vector.extract_strided_slice %7 {offsets = [0, 0], sizes = [1, 128], strides = [1, 1]} : vector<3x128xf32> to vector<1x128xf32>
    %c1_i32_10 = arith.constant 1 : i32
    %29 = tpu.dynamic_rotate %6 by %c1_i32_10 dim 0 : vector<256x128xf32>, i32 -> vector<256x128xf32>
    %c-1_i32 = arith.constant -1 : i32
    %30 = vector.broadcast %c-1_i32 : i32 to vector<256x1xi32>
    %31 = arith.addi %24, %30 : vector<256x1xi32>
    %c0_i32_11 = arith.constant 0 : i32
    %32 = vector.broadcast %c0_i32_11 : i32 to vector<256x1xi32>
    %33 = arith.cmpi sge, %31, %32 : vector<256x1xi32>
    %c-1_i32_12 = arith.constant -1 : i32
    %34 = vector.broadcast %c-1_i32_12 : i32 to vector<256x1xi32>
    %35 = arith.addi %24, %34 : vector<256x1xi32>
    %c8_i32_13 = arith.constant 8 : i32
    %36 = vector.broadcast %c8_i32_13 : i32 to vector<256x1xi32>
    %37 = arith.cmpi slt, %35, %36 : vector<256x1xi32>
    %38 = arith.andi %33, %37 : vector<256x1xi1>
    %cst_14 = arith.constant 0.000000e+00 : f32
    %39 = vector.shape_cast %38 : vector<256x1xi1> to vector<256x1xi1>
    %40 = vector.broadcast %39 : vector<256x1xi1> to vector<256x128xi1>
    %41 = vector.broadcast %cst_14 : f32 to vector<256x128xf32>
    %42 = arith.select %40, %29, %41 : vector<256x128xi1>, vector<256x128xf32>
    %43 = vector.broadcast %28 : vector<1x128xf32> to vector<256x128xf32>
    %44 = arith.mulf %42, %43 : vector<256x128xf32>
    %45 = arith.addf %27, %44 : vector<256x128xf32>
    %46 = vector.extract_strided_slice %7 {offsets = [2, 0], sizes = [1, 128], strides = [1, 1]} : vector<3x128xf32> to vector<1x128xf32>
    %c255_i32 = arith.constant 255 : i32
    %47 = tpu.dynamic_rotate %6 by %c255_i32 dim 0 : vector<256x128xf32>, i32 -> vector<256x128xf32>
    %c1_i32_15 = arith.constant 1 : i32
    %48 = vector.broadcast %c1_i32_15 : i32 to vector<256x1xi32>
    %49 = arith.addi %24, %48 : vector<256x1xi32>
    %c0_i32_16 = arith.constant 0 : i32
    %50 = vector.broadcast %c0_i32_16 : i32 to vector<256x1xi32>
    %51 = arith.cmpi sge, %49, %50 : vector<256x1xi32>
    %c1_i32_17 = arith.constant 1 : i32
    %52 = vector.broadcast %c1_i32_17 : i32 to vector<256x1xi32>
    %53 = arith.addi %24, %52 : vector<256x1xi32>
    %c8_i32_18 = arith.constant 8 : i32
    %54 = vector.broadcast %c8_i32_18 : i32 to vector<256x1xi32>
    %55 = arith.cmpi slt, %53, %54 : vector<256x1xi32>
    %56 = arith.andi %51, %55 : vector<256x1xi1>
    %cst_19 = arith.constant 0.000000e+00 : f32
    %57 = vector.shape_cast %56 : vector<256x1xi1> to vector<256x1xi1>
    %58 = vector.broadcast %57 : vector<256x1xi1> to vector<256x128xi1>
    %59 = vector.broadcast %cst_19 : f32 to vector<256x128xf32>
    %60 = arith.select %58, %47, %59 : vector<256x128xi1>, vector<256x128xf32>
    %61 = vector.broadcast %46 : vector<1x128xf32> to vector<256x128xf32>
    %62 = arith.mulf %60, %61 : vector<256x128xf32>
    %63 = arith.addf %45, %62 : vector<256x128xf32>
    %c0_20 = arith.constant 0 : index
    %c0_21 = arith.constant 0 : index
    %64 = vector.load %arg5[%c0_20, %c0_21] : memref<1x128xf32, #tpu.memory_space<vmem>>, vector<1x128xf32>
    %65 = vector.broadcast %64 : vector<1x128xf32> to vector<256x128xf32>
    %66 = arith.addf %63, %65 : vector<256x128xf32>
    %67 = arith.truncf %66 : vector<256x128xf32> to vector<256x128xbf16>
    %c0_22 = arith.constant 0 : index
    %c0_23 = arith.constant 0 : index
    %68 = vector.load %arg6[%c0_22, %c0_23] : memref<128x128xbf16, #tpu.memory_space<vmem>>, vector<128x128xbf16>
    %cst_24 = arith.constant dense<0.000000e+00> : vector<256x128xf32>
    %69 = tpu.matmul %67, %68, %cst_24 {dimension_numbers = #tpu.dot_dimension_numbers<[1], [0], [0], [1], [0, 0, 1, 1], [], []>} : vector<256x128xbf16>, vector<128x128xbf16>, vector<256x128xf32> -> vector<256x128xf32>
    %c0_25 = arith.constant 0 : index
    %c0_26 = arith.constant 0 : index
    %70 = vector.load %arg7[%c0_25, %c0_26] : memref<1x128xf32, #tpu.memory_space<vmem>>, vector<1x128xf32>
    %71 = vector.broadcast %70 : vector<1x128xf32> to vector<256x128xf32>
    %72 = arith.addf %69, %71 : vector<256x128xf32>
    %73 = arith.addf %72, %0 : vector<256x128xf32>
    %c0_27 = arith.constant 0 : index
    %c0_28 = arith.constant 0 : index
    %74 = vector.load %arg8[%c0_27, %c0_28] : memref<256x128xf32, #tpu.memory_space<vmem>>, vector<256x128xf32>
    tpu.vector_store %arg8[%c0_27, %c0_28], %73 {strides = array<i32>} : memref<256x128xf32, #tpu.memory_space<vmem>>, vector<256x128xf32>,
    return
  }
  func.func @transform_0(%arg0: i32) -> (i32, i32) {
    %c0_i32 = arith.constant 0 : i32
    %c0_i32_0 = arith.constant 0 : i32
    return %arg0, %c0_i32 : i32, i32
  }
  func.func @transform_1(%arg0: i32) -> (i32, i32) {
    %c0_i32 = arith.constant 0 : i32
    %c0_i32_0 = arith.constant 0 : i32
    %c0_i32_1 = arith.constant 0 : i32
    return %c0_i32, %c0_i32_0 : i32, i32
  }
  func.func @transform_2(%arg0: i32) -> (i32, i32) {
    %c0_i32 = arith.constant 0 : i32
    %c0_i32_0 = arith.constant 0 : i32
    %c0_i32_1 = arith.constant 0 : i32
    return %c0_i32, %c0_i32_0 : i32, i32
  }
  func.func @transform_3(%arg0: i32) -> (i32, i32) {
    %c0_i32 = arith.constant 0 : i32
    %c0_i32_0 = arith.constant 0 : i32
    %c0_i32_1 = arith.constant 0 : i32
    return %c0_i32, %c0_i32_0 : i32, i32
  }
  func.func @transform_4(%arg0: i32) -> (i32, i32) {
    %c0_i32 = arith.constant 0 : i32
    %c0_i32_0 = arith.constant 0 : i32
    %c0_i32_1 = arith.constant 0 : i32
    return %c0_i32, %c0_i32_0 : i32, i32
  }
  func.func @transform_5(%arg0: i32) -> (i32, i32) {
    %c0_i32 = arith.constant 0 : i32
    %c0_i32_0 = arith.constant 0 : i32
    %c0_i32_1 = arith.constant 0 : i32
    return %c0_i32, %c0_i32_0 : i32, i32
  }
  func.func @transform_6(%arg0: i32) -> (i32, i32) {
    %c0_i32 = arith.constant 0 : i32
    %c0_i32_0 = arith.constant 0 : i32
    %c0_i32_1 = arith.constant 0 : i32
    return %c0_i32, %c0_i32_0 : i32, i32
  }
  func.func @transform_7(%arg0: i32) -> (i32, i32) {
    %c0_i32 = arith.constant 0 : i32
    %c0_i32_0 = arith.constant 0 : i32
    return %arg0, %c0_i32 : i32, i32
  }
}

</mosaic_0001>

<bundles_post_ra>
// kernel: tpu_custom_call.1
= control target key start
LH: loop header
LB: loop body
LE: loop exit
PB: predicated region body
PF: predicated region fallthrough
CT: control target
= control target key end

     0   :  { %s4242_s0 = inlined_call_operand.hbm [shape: f32[512,128], index: 0, kind: input, shape index: {}]   ;;  %s4243_s1 = inlined_call_operand.hbm [shape: bf16[128,128], index: 1, kind: input, shape index: {}]   ;;  %s4244_s2 = inlined_call_operand.vmem [shape: f32[1,128], index: 2, kind: input, shape index: {}]   ;;  %s4245_s3 = inlined_call_operand.vmem [shape: f32[3,128], index: 3, kind: input, shape index: {}]   ;;  %s4246_s4 = inlined_call_operand.vmem [shape: f32[1,128], index: 4, kind: input, shape index: {}]   ;;  %s4247_s5 = inlined_call_operand.hbm [shape: bf16[128,128], index: 5, kind: input, shape index: {}]   ;;  %s4248_s6 = inlined_call_operand.vmem [shape: f32[1,128], index: 6, kind: input, shape index: {}]   ;;  %s4249_s7 = inlined_call_operand.hbm [shape: f32[512,128], index: 7, kind: output, shape index: {}]  }
   0x1   :  { %4304 = sst [smem:[#allocation64_spill]] %s4243_s1 }
   0x2   :  { %12 = vsyncpa [#allocation3], 0 }
   0x3   :  { %14 = vsyncpa [#allocation3 + $0x1], 0 }
   0x4   :  { %15 = vsyncpa [#allocation6], 0 }
   0x5   :  { %16 = vsyncpa [#allocation4], 0 }
   0x6   :  { %18 = vsyncpa [#allocation4 + $0x1], 0  ;;  %s2738_s24 = smov 0   ;;  %s2740_s25 = smov 0  }
   0x7   :  { %s2742_s26 = smov 0   ;;  %s2744_s27 = smov 0  }
   0x8 LB: > { %s2759_s28 = sadd.s32 4294967295, %s2686_s27   ;;  %s2234_s29 = sadd.s32 4294967294, %s2686_s27   ;;  %s2686_s27 = sphi %s2744_s27, %s4474_s27   ;;  %s2682_s26 = sphi %s2742_s26, %s4473_s26   ;;  %s2678_s25 = sphi %s2740_s25, %s4472_s25   ;;  %s2674_s24 = sphi %s2738_s24, %s4471_s24  }
   0x9   : > { %p44_p0 = scmp.ne.s32.totalorder %s2678_s25, %s2674_s24  ;;  %p4250_p1 = scmp.eq.s32.totalorder %s2759_s28, 0 }
   0xa   : > { %p200_p3 = scmp.eq.s32.totalorder %s2234_s29, 1  ;;  %p2235_p5 = scmp.ge.s32.totalorder %s2686_s27, 1 }
   0xb   : > { %p2768_p4 = por %p4250_p1, %p44_p0  ;;  %p207_p7 = scmp.lt.s32.totalorder %s2686_s27, 3 }
   0xc   : > { %p2773_p6 = por %p200_p3, %p44_p0  ;;  %s2688_s10 = smov [#allocation5]  }
   0xd   : > { %s4305_s30 = scalar_select %p2768_p4, 1, 0 }
   0xe   : > { %s4306_s8 = scalar_select %p2773_p6, 1, 0 }
   0xf   : > { %p2778_p8 = pnand %p2235_p5, %p207_p7  ;;  %s219_s11 = sshll.u32 %s2688_s10, 4  ;;  %s220_s11 = int_to_ptr.vmem [resolvable:$true] %s219_s11 }
  0x10   : > { %s2689_s13 = smov [#allocation7]   ;;  %s2549_s15 = scalar_lea.vmem %s220_s11, 1024 }
  0x11   : > { %s4307_s9 = scalar_select %p2778_p8, 1, 0 }
  0x12   : > { %p2429_p9 = pneg %p2778_p8  ;;  %s241_s14 = sshll.u32 %s2689_s13, 4  ;;  %s242_s14 = int_to_ptr.vmem [resolvable:$true] %s241_s14 }
  0x13   : > { %p2550_p13 = scmp.ne.s32.totalorder %s220_s11, %s2549_s15  ;;  %p2557_p5 = scmp.lt.s32.totalorder %s220_s11, %s220_s11 }
  0x14   : > { %p2787_p11 = pnand %p2429_p9, %p4250_p1  ;;  %p2558_p7 = scmp.lt.s32.totalorder %s2549_s15, %s2549_s15 }
  0x16   : > { %p2540_p12 = pneg %p2787_p11  ;;  %p2559_p10 = por %p2558_p7, %p2557_p5 }
  0x18   : > { %p2552_p0 = pnand %p2550_p13, %p2540_p12 }
  0x1a   : > { %p2553_p3 = pneg %p2552_p0 }
  0x1c   : > { %p2560_p9 = pnand %p2559_p10, %p2553_p3 }
  0x1e   : > { %2563 = shalt.err (!%p2560_p9)
}
  0x1f   : > { %s2690_s16 = smov 64   ;;  %s2691_s17 = smov 4  }
  0x20   : > { %s4309_s1 = sld [smem:[#allocation64_spill]]  ;;  %s2575_s20 = scalar_lea.vmem %s242_s14, 1024 }
  0x21   : > { %p2576_p1 = scmp.ne.s32.totalorder %s242_s14, %s2575_s20  ;;  %p2583_p2 = scmp.lt.s32.totalorder %s242_s14, %s242_s14 }
  0x22   : > { %p2584_p6 = scmp.lt.s32.totalorder %s2575_s20, %s2575_s20 }
  0x23   : > { %p2578_p13 = pnand %p2576_p1, %p2540_p12 }
  0x24   : > { %p2585_p5 = por %p2584_p6, %p2583_p2 }
  0x25   : > { %p2579_p0 = pneg %p2578_p13 }
  0x26   : > { %2432 = dma.hbm_to_vmem [thread:$0]  (!%p2787_p11), %s4309_s1, 1024, %s220_s11, [#allocation6], %s2690_s16, %s2690_s16, %s2691_s17  }
  0x27   : > { %p2586_p10 = pnand %p2585_p5, %p2579_p0 }
  0x29   : > { %2589 = shalt.err (!%p2586_p10)
}
  0x2a   : > { %2435 = dma.hbm_to_vmem [thread:$0]  (!%p2787_p11), %s4247_s5, 1024, %s242_s14, [#allocation6], %s2690_s16, %s2690_s16, %s2691_s17  }
  0x2b   : > { %s2810_s23 = sadd.s32 1, %s2686_s27   ;;  %s31_s29 = sadd.s32 1, %s2682_s26 }
  0x2c   : > { %s28_s10 = ssub.s32 %s2686_s27, %s2810_s23  ;;  %p38_p1 = scmp.ne.s32.totalorder %s2682_s26, %s2678_s25 }
  0x2d   : > { %p29_p2 = scmp.eq.s32.totalorder %s28_s10, 0  ;;  %p39_p6 = scmp.eq.s32.totalorder %s2686_s27, 0 }
  0x2e   : > { %p4310_p12 = scmp.eq.s32.totalorder %s2759_s28, 1  ;;  %p2446_p7 = scmp.lt.s32.totalorder %s2686_s27, 2 }
  0x2f   : > { %s2826_s12 = scalar_select %p29_p2, %s2682_s26, %s31_s29  }
  0x30   : > { %p2820_p3 = por %p4310_p12, %p38_p1  ;;  %p40_p9 = por %p39_p6, %p38_p1 }
  0x31   : > { %s258_s13 = sand.u32 1, %s2682_s26   ;;  %s2271_s14 = sshll.u32 %s2686_s27, 12 }
  0x32   : > { %s4311_s11 = scalar_select %p2820_p3, 1, 0 }
  0x33   : > { %s2239_s15 = sshll.u32 %s258_s13, 8  ;;  %s2833_s18 = scalar_lea.hbm %s4242_s0, %s2271_s14 }
  0x34   : > { %s262_s19 = scalar_lea.vmem [#allocation2], %s2239_s15  ;;  %p2837_p11 = pnand %p2446_p7, %p40_p9 }
  0x35   : > { %s269_s20 = sshll.u32 %s262_s19, 4  ;;  %s2841_s22 = scalar_lea.sflag [#allocation3], %s258_s13  ;;  %s2835_s20 = int_to_ptr.vmem [resolvable:$true] %s269_s20 }
  0x36   : > { %s2590_s29 = scalar_lea.hbm %s2833_s18, 4096  ;;  %p2592_p0 = pneg %p2837_p11 }
  0x37   : > { %p2591_p13 = scmp.ne.s32.totalorder %s2833_s18, %s2590_s29  ;;  %s2595_s15 = scalar_lea.hbm %s4242_s0, 8192 }
  0x38   : > { %p2596_p1 = scmp.lt.s32.totalorder %s2833_s18, %s4242_s0  ;;  %p2597_p2 = scmp.lt.s32.totalorder %s2595_s15, %s2590_s29 }
  0x39   : > { %p2593_p5 = pnand %p2592_p0, %p2591_p13 }
  0x3a   : > { %p2598_p6 = por %p2597_p2, %p2596_p1 }
  0x3b   : > { %p2594_p10 = pneg %p2593_p5 }
  0x3d   : > { %p2599_p12 = pnand %p2598_p6, %p2594_p10 }
  0x3f   : > { %2602 = shalt.err (!%p2599_p12)
}
  0x40   : > { %s2603_s13 = scalar_lea.vmem %s2835_s20, 4096  ;;  %s2692_s19 = smov [#allocation2]  }
  0x41   : > { %p2604_p7 = scmp.ne.s32.totalorder %s2835_s20, %s2603_s13  ;;  %s2608_s1 = sshll.u32 %s2692_s19, 4  ;;  %s2609_s1 = int_to_ptr.vmem [resolvable:$false] %s2608_s1 }
  0x42   : > { %s2610_s10 = scalar_lea.vmem %s2609_s1, 8192  ;;  %p2611_p5 = scmp.lt.s32.totalorder %s2835_s20, %s2609_s1 }
  0x43   : > { %p2606_p9 = pnand %p2604_p7, %p2592_p0  ;;  %p2612_p3 = scmp.lt.s32.totalorder %s2610_s10, %s2603_s13 }
  0x45   : > { %p2607_p13 = pneg %p2606_p9  ;;  %p2613_p4 = por %p2612_p3, %p2611_p5 }
  0x47   : > { %p2614_p8 = pnand %p2613_p4, %p2607_p13 }
  0x49   : > { %2617 = shalt.err (!%p2614_p8)
}
  0x4a   : > { %s2693_s29 = smov 128   ;;  %s2694_s14 = smov 8  }
  0x4b   : > { %2439 = dma.hbm_to_vmem [thread:$0]  (!%p2837_p11), %s2833_s18, 4096, %s2835_s20, %s2841_s22, %s2693_s29, %s2693_s29, %s2694_s14  }
  0x4c   : > { %p4313_p0 = scmp.ne.s32.totalorder %s4307_s9, 0 }
  0x4e   : > { %281 = sbr.rel (%p4313_p0) target bundleno = 691 (0x2b3), region = 48 }
  0x53   : > { %s2865_s15 = sand.u32 1, %s2678_s25   ;;  %p4314_p4 = scmp.ne.s32.totalorder %s4305_s30, 0 }
  0x54   : > { %s2243_s1 = sshll.u32 %s2865_s15, 8  ;;  %s284_s16 = scalar_lea.sflag [#allocation3], %s2865_s15 }
  0x55   : > { %s2871_s17 = scalar_lea.vmem [#allocation2], %s2243_s1 }
  0x56   : > { %2661 = dma.done.wait (%p4314_p4), %s284_s16, 4096  }
  0x57   : > { %2663 = vsyncadd (%p4314_p4), %s284_s16, 4294963200  ;;  %p4315_p8 = scmp.eq.s32.totalorder %s2759_s28, 0 }
  0x59   : > { %2665 = dma.done.wait (%p4315_p8), [#allocation6], 2048   ;;  %p4316_p3 = pmov %p4315_p8 }
  0x5a   : > { %v2490_v0 = vld [vmem:[#allocation5 + $0x38] sm:$0xff]   ;;  %v2491_v1 = vld [vmem:[#allocation5 + $0x30] sm:$0xff]   ;;  %v2492_v2 = vld [vmem:[#allocation5 + $0x28] sm:$0xff]   ;;  %s4097_s10 = scalar_lea.vmem [#allocation8], %s2243_s1  ;;  %s2272_s29 = sshll.u32 %s2759_s28, 12 }
  0x5b   : > { %2667 = vsyncadd (%p4316_p3), [#allocation6], 4294965248  ;;  %2321 = vmatprep.subr.bf16.mxu0 %v2490_v0  ;;  %v2493_v3 = vld [vmem:[#allocation5 + $0x20] sm:$0xff]   ;;  %v330_v5 = vld [vmem:[%s2871_s17 + $0x8] sm:$0xff]  ;;  %s2142_s14 = sshll.u32 %s4097_s10, 4  ;;  %s4194_s30 = scalar_lea.hbm %s4249_s7, %s2272_s29  ;;  %s4196_s14 = int_to_ptr.vmem [resolvable:$true] %s2142_s14 }
  0x5c   : > { %2322 = vmatpush3.bf16.msra.mxu0 %v2490_v0  ;;  %v329_v4 = vld [vmem:[%s2871_s17] sm:$0xff]  ;;  %v2494_v7 = vld [vmem:[#allocation5 + $0x18] sm:$0xff]   ;;  %v2495_v8 = vld [vmem:[#allocation5 + $0x10] sm:$0xff]   ;;  %v610_v0 = vlaneseq  ;;  %s2129_s28 = scalar_lea.sflag [#allocation4], %s2865_s15  ;;  %s2618_s9 = scalar_lea.vmem %s4196_s14, 4096 }
  0x5d   : > { %2323 = vmatprep.subr.bf16.mxu0 %v2491_v1  ;;  %v361_v6 = vpack.c.bf16 %v330_v5, %v329_v4  ;;  %v2496_v9 = vld [vmem:[#allocation5 + $0x8] sm:$0xff]   ;;  %v2497_v10 = vld [vmem:[#allocation5] sm:$0xff]   ;;  %v331_v11 = vld [vmem:[%s2871_s17 + $0x10] sm:$0xff]  ;;  %p2619_p11 = scmp.ne.s32.totalorder %s4196_s14, %s2618_s9  ;;  %p4468_p10 = scmp.ne.s32.totalorder %s4311_s11, 0 }
  0x5e   : > { %v332_v12 = vld [vmem:[%s2871_s17 + $0x18] sm:$0xff]  ;;  %v333_v13 = vld [vmem:[%s2871_s17 + $0x20] sm:$0xff]  ;;  %v334_v14 = vld [vmem:[%s2871_s17 + $0x28] sm:$0xff]  ;;  %s2695_s18 = smov [#allocation8]  }
  0x5f   : > { %2337 = vmatprep.mubr.bf16.mxu0 %v361_v6  ;;  %v362_v15 = vpack.c.bf16 %v332_v12, %v331_v11  ;;  %v363_v16 = vpack.c.bf16 %v334_v14, %v333_v13  ;;  %v335_v17 = vld [vmem:[%s2871_s17 + $0x30] sm:$0xff]  ;;  %v336_v18 = vld [vmem:[%s2871_s17 + $0x38] sm:$0xff]  ;;  %v337_v19 = vld [vmem:[%s2871_s17 + $0x40] sm:$0xff]  ;;  %p2620_p1 = pnand %p2619_p11, %p4468_p10  ;;  %s2622_s20 = sshll.u32 %s2695_s18, 4  ;;  %s2623_s20 = int_to_ptr.vmem [resolvable:$false] %s2622_s20 }
  0x60   : > { %2324 = vmatpush3.bf16.msra.mxu0 %v2491_v1  ;;  %v338_v20 = vld [vmem:[%s2871_s17 + $0x48] sm:$0xff]  ;;  %v364_v21 = vpack.c.bf16 %v336_v18, %v335_v17  ;;  %v339_v23 = vld [vmem:[%s2871_s17 + $0x50] sm:$0xff]  ;;  %v340_v24 = vld [vmem:[%s2871_s17 + $0x58] sm:$0xff]  ;;  %v2913_v1 = vshrl.u32 %v610_v0, 7  ;;  %s2624_s21 = scalar_lea.vmem %s2623_s20, 8192  ;;  %p2625_p6 = scmp.lt.s32.totalorder %s4196_s14, %s2623_s20 }
  0x61   : > { %2325 = vmatprep.subr.bf16.mxu0 %v2492_v2  ;;  %v365_v22 = vpack.c.bf16 %v338_v20, %v337_v19  ;;  %v341_v25 = vld [vmem:[%s2871_s17 + $0x60] sm:$0xff]  ;;  %v342_v26 = vld [vmem:[%s2871_s17 + $0x68] sm:$0xff]  ;;  %v366_v27 = vpack.c.bf16 %v340_v24, %v339_v23  ;;  %v343_v29 = vld [vmem:[%s2871_s17 + $0x70] sm:$0xff]  ;;  %p2621_p2 = pneg %p2620_p1  ;;  %p2626_p12 = scmp.lt.s32.totalorder %s2624_s21, %s2618_s9 }
  0x62   : > { %v367_v28 = vpack.c.bf16 %v342_v26, %v341_v25  ;;  %v344_v30 = vld [vmem:[%s2871_s17 + $0x78] sm:$0xff]  ;;  %v345_v31 = vld [vmem:[%s2871_s17 + $0x80] sm:$0xff]  ;;  %v346_v32 = vld [vmem:[%s2871_s17 + $0x88] sm:$0xff]  ;;  %v615_v4 = vadd.s32 32, %v2913_v1  ;;  %v617_v5 = vadd.s32 48, %v2913_v1  ;;  %v618_v6 = vadd.s32 56, %v2913_v1 }
  0x63   : > { %v368_v33 = vpack.c.bf16 %v344_v30, %v343_v29  ;;  %v369_v34 = vpack.c.bf16 %v346_v32, %v345_v31  ;;  %v347_v35 = vld [vmem:[%s2871_s17 + $0x90] sm:$0xff]  ;;  %v348_v36 = vld [vmem:[%s2871_s17 + $0x98] sm:$0xff]  ;;  %v349_v37 = vld [vmem:[%s2871_s17 + $0xa0] sm:$0xff]  ;;  %v1354_v13 = vsub.s32 0, %v2913_v1  ;;  %v619_v19 = vadd.s32 64, %v2913_v1  ;;  %p2627_p7 = por %p2626_p12, %p2625_p6 }
  0x64   : > { %2326 = vmatpush3.bf16.msra.mxu0 %v2492_v2  ;;  %v350_v38 = vld [vmem:[%s2871_s17 + $0xa8] sm:$0xff]  ;;  %v370_v39 = vpack.c.bf16 %v348_v36, %v347_v35  ;;  %v351_v41 = vld [vmem:[%s2871_s17 + $0xb0] sm:$0xff]  ;;  %v352_v42 = vld [vmem:[%s2871_s17 + $0xb8] sm:$0xff]  ;;  %v614_v2 = vadd.s32 24, %v2913_v1  ;;  %v675_v14 = vand.u32 7, %v615_v4  ;;  %v689_v17 = vand.u32 7, %v617_v5 }
  0x65   : > { %2327 = vmatprep.subr.bf16.mxu0 %v2493_v3  ;;  %v371_v40 = vpack.c.bf16 %v350_v38, %v349_v37  ;;  %v353_v43 = vld [vmem:[%s2871_s17 + $0xc0] sm:$0xff]  ;;  %v354_v44 = vld [vmem:[%s2871_s17 + $0xc8] sm:$0xff]  ;;  %v372_v45 = vpack.c.bf16 %v352_v42, %v351_v41  ;;  %v355_v47 = vld [vmem:[%s2871_s17 + $0xd0] sm:$0xff]  ;;  %v696_v18 = vand.u32 7, %v618_v6  ;;  %v622_v23 = vadd.s32 88, %v2913_v1  ;;  %p2628_p9 = pnand %p2627_p7, %p2621_p2 }
  0x66   : > { %v373_v46 = vpack.c.bf16 %v354_v44, %v353_v43  ;;  %v356_v48 = vld [vmem:[%s2871_s17 + $0xd8] sm:$0xff]  ;;  %v357_v49 = vld [vmem:[%s2871_s17 + $0xe0] sm:$0xff]  ;;  %v358_v50 = vld [vmem:[%s2871_s17 + $0xe8] sm:$0xff]  ;;  %v2946_v29 = vadd.s32 4294967295, %v675_v14  ;;  %v620_v31 = vadd.s32 72, %v2913_v1  ;;  %v2955_v35 = vadd.s32 1, %v689_v17 }
  0x67   : > { %v374_v51 = vpack.c.bf16 %v356_v48, %v355_v47  ;;  %v375_v52 = vpack.c.bf16 %v358_v50, %v357_v49  ;;  %v359_v53 = vld [vmem:[%s2871_s17 + $0xf0] sm:$0xff]  ;;  %v360_v54 = vld [vmem:[%s2871_s17 + $0xf8] sm:$0xff]  ;;  %v2500_v58 = vld [vmem:[#allocation7 + $0x28] sm:$0xff]   ;;  %v703_v36 = vand.u32 7, %v619_v19  ;;  %v4254_v37 = vand.u32 7, %v2913_v1 }
  0x68   : > { %2328 = vmatpush3.bf16.msra.mxu0 %v2493_v3  ;;  %v376_v55 = vpack.c.bf16 %v360_v54, %v359_v53  ;;  %v2498_v56 = vld [vmem:[#allocation7 + $0x38] sm:$0xff]   ;;  %v2499_v57 = vld [vmem:[#allocation7 + $0x30] sm:$0xff]   ;;  %v2501_v59 = vld [vmem:[#allocation7 + $0x20] sm:$0xff]   ;;  %v613_v3 = vadd.s32 16, %v2913_v1  ;;  %v623_v41 = vadd.s32 96, %v2913_v1  ;;  %v2965_v43 = vadd.s32 1, %v675_v14 }
  0x69   : > { %2329 = vmatprep.subr.bf16.mxu0 %v2494_v7  ;;  %2369 = vmatprep.subr.bf16.mxu1 %v2498_v56  ;;  %v2502_v60 = vld [vmem:[#allocation7 + $0x18] sm:$0xff]   ;;  %v2503_v61 = vld [vmem:[#allocation7 + $0x10] sm:$0xff]   ;;  %v2504_v62 = vld [vmem:[#allocation7 + $0x8] sm:$0xff]   ;;  %v710_v47 = vand.u32 7, %v620_v31  ;;  %v625_v48 = vadd.s32 112, %v2913_v1  ;;  %v626_v49 = vadd.s32 120, %v2913_v1 }
  0x6a   : > { %2370 = vmatpush3.bf16.msra.mxu1 %v2498_v56  ;;  %v2505_v63 = vld [vmem:[#allocation7] sm:$0xff]   ;;  %v661_v12 = vand.u32 7, %v613_v3  ;;  %v2978_v53 = vadd.s32 1, %v696_v18  ;;  %v624_v54 = vadd.s32 104, %v2913_v1  ;;  %vm1095_vm0 = vcmp.lt.s32.totalorder %v2913_v1, 1 }
  0x6b   : > { %2371 = vmatprep.subr.bf16.mxu1 %v2499_v57  ;;  %v609_v11 = vld [vmem:[%s4245_s3] sm:$0x7]  ;;  %v745_v4 = vand.u32 7, %v625_v48  ;;  %v752_v5 = vand.u32 7, %v626_v49  ;;  %vm1452_vm2 = vcmp.lt.s32.totalorder %v2913_v1, 7  ;;  %vm1164_vm5 = vcmp.ge.s32.totalorder %v2946_v29, 0 }
  0x6c   : > { %2330 = vmatpush3.bf16.msra.mxu0 %v2494_v7  ;;  %v1029_v7 = vsub.s32 1, %v2913_v1  ;;  %v2939_v25 = vrot.slane %v609_v11, %v1354_v13  ;;  %v2941_v26 = vadd.s32 1, %v661_v12  ;;  %vm1555_vm11 = vcmp.lt.s32.totalorder %v2955_v35, 8 }
  0x6d   : > { %2331 = vmatprep.subr.bf16.mxu0 %v2495_v8  ;;  %v3020_v31 = vadd.s32 1, %v745_v4  ;;  %v3035_v49 = vadd.s32 1, %v752_v5  ;;  %vm1553_vm12 = vcmp.lt.s32.totalorder %v2965_v43, 8 }
  0x6e   : > { %2372 = vmatpush3.bf16.msra.mxu1 %v2499_v57  ;;  %v2932_v20 = vrot.slane %v609_v11, %v1029_v7  ;;  %v731_v57 = vand.u32 7, %v623_v41  ;;  %v3004_v7 = vadd.s32 1, %v703_v36  ;;  %vm1551_vm4 = vcmp.lt.s32.totalorder %v2941_v26, 8 }
  0x6f   : > { %2373 = vmatprep.subr.bf16.mxu1 %v2500_v58  ;;  %4319 = vst [vmem:[#allocation14_spill] sm:$0xff] %v3020_v31  ;;  %4324 = vst [vmem:[#allocation19_spill] sm:$0xff] %v3035_v49 }
  0x70   : > { %2332 = vmatpush3.bf16.msra.mxu0 %v2495_v8  ;;  %v668_v8 = vand.u32 7, %v614_v2  ;;  %v2998_v2 = vadd.s32 4294967295, %v710_v47  ;;  %v3009_v13 = vadd.s32 4294967295, %v731_v57 }
  0x71   : > { %2333 = vmatprep.subr.bf16.mxu0 %v2496_v9 }
  0x72   : > { %2374 = vmatpush3.bf16.msra.mxu1 %v2500_v58  ;;  %v2948_v30 = vadd.s32 1, %v668_v8  ;;  %v627_v58 = vadd.s32 128, %v2913_v1 }
  0x73   : > { %2375 = vmatprep.subr.bf16.mxu1 %v2501_v59 }
  0x74   : > { %2334 = vmatpush3.bf16.msra.mxu0 %v2496_v9  ;;  %v616_v9 = vadd.s32 40, %v2913_v1  ;;  %v759_v14 = vand.u32 7, %v627_v58  ;;  %vm1552_vm9 = vcmp.lt.s32.totalorder %v2948_v30, 8 }
  0x75   : > { %2335 = vmatprep.subr.bf16.mxu0 %v2497_v10 }
  0x76   : > { %2376 = vmatpush3.bf16.msra.mxu1 %v2501_v59  ;;  %v3033_v48 = vadd.s32 4294967295, %v759_v14 }
  0x77   : > { %2377 = vmatprep.subr.bf16.mxu1 %v2502_v60 }
  0x78   : > { %2336 = vmatpush3.bf16.msra.mxu0 %v2497_v10  ;;  %4323 = vst [vmem:[#allocation18_spill] sm:$0xff] %v3033_v48 }
  0x7a   : > { %2378 = vmatpush3.bf16.msra.mxu1 %v2502_v60 }
  0x7b   : > { %2338 = vmatmul.mubr.bf16.vlgmr.msra.gmra.mxu0 %v362_v15  ;;  %2379 = vmatprep.subr.bf16.mxu1 %v2503_v61  ;;  %v612_v15 = vadd.s32 8, %v2913_v1 }
  0x7c   : > { %2341 = vmatprep.mubr.bf16.mxu0 %v363_v16 }
  0x7d   : > { %v654_v32 = vand.u32 7, %v612_v15  ;;  %v634_v15 = vadd.s32 184, %v2913_v1 }
  0x7e   : > { %2380 = vmatpush3.bf16.msra.mxu1 %v2503_v61 }
  0x7f   : > { %2381 = vmatprep.subr.bf16.mxu1 %v2504_v62  ;;  %v2972_v50 = vadd.s32 4294967295, %v654_v32  ;;  %v2988_v59 = vadd.s32 1, %v654_v32  ;;  %v3022_v32 = vadd.s32 4294967295, %v745_v4  ;;  %v808_v58 = vand.u32 7, %v634_v15 }
  0x81   : > { %v3067_v48 = vadd.s32 4294967295, %v808_v58  ;;  %vm1161_vm7 = vcmp.ge.s32.totalorder %v2972_v50, 0 }
  0x82   : > { %2382 = vmatpush3.bf16.msra.mxu1 %v2504_v62  ;;  %v629_v62 = vadd.s32 144, %v2913_v1 }
  0x83   : > { %2342 = vmatmul.mubr.bf16.gmra.mxu0 %v364_v21  ;;  %2383 = vmatprep.subr.bf16.mxu1 %v2505_v63  ;;  %v2934_v21 = vadd.s32 4294967295, %v668_v8  ;;  %v3006_v8 = vadd.s32 1, %v710_v47  ;;  %v632_v47 = vadd.s32 168, %v2913_v1  ;;  %4333 = vst [vmem:[#allocation28_spill] sm:$0xff] %v3067_v48  ;;  %v641_v48 = vadd.s32 240, %v2913_v1 }
  0x84   : > { %2345 = vmatprep.mubr.bf16.mxu0 %v365_v22  ;;  %v682_v22 = vand.u32 7, %v616_v9  ;;  %v738_v9 = vand.u32 7, %v624_v54  ;;  %v773_v19 = vand.u32 7, %v629_v62 }
  0x85   : > { %vm1163_vm1 = vcmp.ge.s32.totalorder %v2934_v21, 0 }
  0x86   : > { %2384 = vmatpush3.bf16.msra.mxu1 %v2505_v63  ;;  %v2958_v38 = vadd.s32 4294967295, %v682_v22  ;;  %v2967_v44 = vadd.s32 1, %v682_v22  ;;  %v630_v63 = vadd.s32 152, %v2913_v1 }
  0x88   : > { %v780_v22 = vand.u32 7, %v630_v63  ;;  %vm1165_vm8 = vcmp.ge.s32.totalorder %v2958_v38, 0  ;;  %vm1554_vm13 = vcmp.lt.s32.totalorder %v2967_v44, 8 }
  0x8a   : > { %v3039_v63 = vadd.s32 4294967295, %v780_v22 }
  0x8b   : > { %2346 = vmatmul.mubr.bf16.gmra.mxu0 %v366_v27  ;;  %v2943_v27 = vadd.s32 4294967295, %v661_v12  ;;  %v628_v12 = vadd.s32 136, %v2913_v1 }
  0x8c   : > { %2349 = vmatprep.mubr.bf16.mxu0 %v367_v28  ;;  %v621_v28 = vadd.s32 80, %v2913_v1  ;;  %4325 = vst [vmem:[#allocation20_spill] sm:$0xff] %v3039_v63  ;;  %v3065_v63 = vadd.s32 1, %v780_v22 }
  0x8d   : > { %vm1162_vm3 = vcmp.ge.s32.totalorder %v2943_v27, 0 }
  0x8e   : > { %4332 = vst [vmem:[#allocation27_spill] sm:$0xff] %v3065_v63 }
  0x93   : > { %2350 = vmatmul.mubr.bf16.gmra.mxu0 %v368_v33 }
  0x94   : > { %2353 = vmatprep.mubr.bf16.mxu0 %v369_v34  ;;  %v2953_v34 = vadd.s32 4294967295, %v696_v18 }
  0x96   : > { %vm1167_vm6 = vcmp.ge.s32.totalorder %v2953_v34, 0 }
  0x9b   : > { %2354 = vmatmul.mubr.bf16.gmra.mxu0 %v370_v39  ;;  %v2960_v39 = vadd.s32 4294967295, %v689_v17 }
  0x9c   : > { %2357 = vmatprep.mubr.bf16.mxu0 %v371_v40  ;;  %v724_v40 = vand.u32 7, %v622_v23  ;;  %v633_v23 = vadd.s32 176, %v2913_v1 }
  0x9d   : > { %vm1166_vm10 = vcmp.ge.s32.totalorder %v2960_v39, 0 }
  0x9e   : > { %v2985_v56 = vadd.s32 4294967295, %v724_v40  ;;  %v3015_v18 = vadd.s32 1, %v724_v40  ;;  %v766_v40 = vand.u32 7, %v628_v12  ;;  %v801_v4 = vand.u32 7, %v633_v23 }
  0x9f   : > { %v637_v12 = vadd.s32 208, %v2913_v1  ;;  %v794_v23 = vand.u32 7, %v632_v47 }
  0xa0   : > { %4318 = vst [vmem:[#allocation13_spill] sm:$0xff] %v3015_v18  ;;  %v3052_v49 = vadd.s32 4294967295, %v766_v40  ;;  %v3077_v47 = vadd.s32 1, %v801_v4  ;;  %v3089_v31 = vadd.s32 4294967295, %v801_v4  ;;  %vm1171_vm15 = vcmp.ge.s32.totalorder %v2985_v56, 0 }
  0xa2   : > { %4328 = vst [vmem:[#allocation23_spill] sm:$0xff] %v3052_v49  ;;  %4334 = vst [vmem:[#allocation29_spill] sm:$0xff] %v3077_v47 }
  0xa3   : > { %2358 = vmatmul.mubr.bf16.gmra.mxu0 %v372_v45  ;;  %v717_v45 = vand.u32 7, %v621_v28  ;;  %v3018_v28 = vadd.s32 4294967295, %v752_v5  ;;  %v638_v5 = vadd.s32 216, %v2913_v1  ;;  %4336 = vst [vmem:[#allocation31_spill] sm:$0xff] %v3089_v31 }
  0xa4   : > { %2361 = vmatprep.mubr.bf16.mxu0 %v373_v46  ;;  %v1711_v46 = vsub.s32 2, %v2913_v1 }
  0xa5   : > { %v2992_v61 = vadd.s32 1, %v717_v45  ;;  %v3000_v3 = vadd.s32 4294967295, %v717_v45  ;;  %v3028_v45 = vadd.s32 4294967295, %v738_v9  ;;  %v836_v22 = vand.u32 7, %v638_v5 }
  0xa6   : > { %v2996_v0 = vrot.slane %v609_v11, %v1711_v46  ;;  %v631_v11 = vadd.s32 160, %v2913_v1  ;;  %v3030_v46 = vadd.s32 1, %v738_v9  ;;  %v3045_v9 = vadd.s32 4294967295, %v773_v19 }
  0xa7   : > { %4321 = vst [vmem:[#allocation16_spill] sm:$0xff] %v3028_v45 }
  0xa8   : > { %4317 = vst [vmem:[#allocation12_spill] sm:$0xff] %v2996_v0  ;;  %4322 = vst [vmem:[#allocation17_spill] sm:$0xff] %v3030_v46  ;;  %v787_v54 = vand.u32 7, %v631_v11  ;;  %v636_v11 = vadd.s32 200, %v2913_v1  ;;  %v3054_v0 = vadd.s32 1, %v759_v14  ;;  %v639_v46 = vadd.s32 224, %v2913_v1 }
  0xa9   : > { %4327 = vst [vmem:[#allocation22_spill] sm:$0xff] %v3045_v9 }
  0xaa   : > { %4329 = vst [vmem:[#allocation24_spill] sm:$0xff] %v3054_v0  ;;  %v3063_v9 = vadd.s32 4294967295, %v787_v54  ;;  %v642_v0 = vadd.s32 248, %v2913_v1  ;;  %v822_v63 = vand.u32 7, %v636_v11  ;;  %v3091_v18 = vadd.s32 1, %v787_v54 }
  0xab   : > { %2362 = vmatmul.mubr.bf16.gmra.mxu0 %v374_v51  ;;  %v843_v5 = vand.u32 7, %v639_v46  ;;  %v640_v11 = vadd.s32 232, %v2913_v1 }
  0xac   : > { %2365 = vmatprep.mubr.bf16.mxu0 %v375_v52  ;;  %v2976_v52 = vadd.s32 4294967295, %v703_v36  ;;  %v3024_v36 = vadd.s32 1, %v731_v57  ;;  %v3041_v57 = vadd.s32 1, %v773_v19  ;;  %v3061_v19 = vld [vmem:[%s4244_s2] ss:$0 sm:$0xff]  ;;  %4331 = vst [vmem:[#allocation26_spill] sm:$0xff] %v3063_v9 }
  0xad   : > { %v829_v9 = vand.u32 7, %v637_v12  ;;  %4337 = vst [vmem:[#allocation32_spill] sm:$0xff] %v3091_v18  ;;  %v3096_v12 = vadd.s32 1, %v808_v58  ;;  %v864_v18 = vand.u32 7, %v642_v0  ;;  %v3113_v46 = vadd.s32 4294967295, %v822_v63 }
  0xae   : > { %4320 = vst [vmem:[#allocation15_spill] sm:$0xff] %v3024_v36  ;;  %4326 = vst [vmem:[#allocation21_spill] sm:$0xff] %v3041_v57  ;;  %v3056_v57 = vadd.s32 1, %v766_v40  ;;  %v3087_v36 = vadd.s32 4294967295, %v794_v23  ;;  %v3123_v45 = vadd.s32 1, %v822_v63  ;;  %vm1168_vm14 = vcmp.ge.s32.totalorder %v2976_v52, 0 }
  0xaf   : > { %4339 = vst [vmem:[#allocation34_spill] sm:$0xff] %v3096_v12  ;;  %v3111_v58 = vadd.s32 1, %v829_v9  ;;  %4343 = vst [vmem:[#allocation38_spill] sm:$0xff] %v3113_v46  ;;  %v857_v12 = vand.u32 7, %v641_v48  ;;  %v3119_v31 = vadd.s32 4294967295, %v829_v9  ;;  %v3132_v48 = vadd.s32 1, %v836_v22 }
  0xb0   : > { %4330 = vst [vmem:[#allocation25_spill] sm:$0xff] %v3056_v57  ;;  %4335 = vst [vmem:[#allocation30_spill] sm:$0xff] %v3087_v36  ;;  %v850_v46 = vand.u32 7, %v640_v11 }
  0xb1   : > { %4342 = vst [vmem:[#allocation37_spill] sm:$0xff] %v3111_v58  ;;  %4344 = vst [vmem:[#allocation39_spill] sm:$0xff] %v3119_v31  ;;  %v3130_v58 = vadd.s32 4294967295, %v843_v5  ;;  %v3151_v11 = vadd.s32 1, %v857_v12  ;;  %v3166_v31 = vadd.s32 4294967295, %v857_v12 }
  0xb2   : > { %4346 = vst [vmem:[#allocation41_spill] sm:$0xff] %v3123_v45  ;;  %4348 = vst [vmem:[#allocation43_spill] sm:$0xff] %v3132_v48  ;;  %v4353_v48 = vand.u32 7, %v2913_v1 }
  0xb3   : > { %2366 = vmatmul.mubr.bf16.gmra.mxu0 %v376_v55  ;;  %v2983_v55 = vadd.s32 1, %v4254_v37  ;;  %v635_v37 = vadd.s32 192, %v2913_v1  ;;  %4347 = vst [vmem:[#allocation42_spill] sm:$0xff] %v3130_v58  ;;  %4351 = vst [vmem:[#allocation46_spill] sm:$0xff] %v3151_v11  ;;  %v3153_v58 = vadd.s32 1, %v864_v18  ;;  %v3178_v11 = vadd.s32 4294967295, %v850_v46 }
  0xb4   : > { %4355 = vst [vmem:[#allocation49_spill] sm:$0xff] %v3166_v31 }
  0xb5   : > { %v815_v57 = vand.u32 7, %v635_v37  ;;  %v3094_v37 = vadd.s32 1, %v794_v23  ;;  %v3109_v23 = vadd.s32 4294967295, %v836_v22  ;;  %4352 = vst [vmem:[#allocation47_spill] sm:$0xff] %v3153_v58  ;;  %4357 = vst [vmem:[#allocation51_spill] sm:$0xff] %v3178_v11 }
  0xb7   : > { %4338 = vst [vmem:[#allocation33_spill] sm:$0xff] %v3094_v37  ;;  %v3107_v54 = vadd.s32 4294967295, %v815_v57  ;;  %4341 = vst [vmem:[#allocation36_spill] sm:$0xff] %v3109_v23  ;;  %v3121_v36 = vadd.s32 1, %v815_v57  ;;  %v3144_v57 = vadd.s32 4294967295, %v864_v18 }
  0xb9   : > { %4340 = vst [vmem:[#allocation35_spill] sm:$0xff] %v3107_v54  ;;  %4345 = vst [vmem:[#allocation40_spill] sm:$0xff] %v3121_v36 }
  0xba   : > { %4350 = vst [vmem:[#allocation45_spill] sm:$0xff] %v3144_v57 }
 0x13b   : > { %v2922_v10 = vpop.f32.mrf.mxu0 }
 0x13c   : > { %v3083_v49 = vadd.f32 %v2922_v10, %v3061_v19 }
 0x13d   : > { %v2929_v16 = vpop.f32.mrf.mxu0 }
 0x13e   : > { %v1065_v37 = vrot.slane %v3083_v49, 7  ;;  %v3149_v22 = vadd.f32 %v3061_v19, %v2929_v16  ;;  %v3168_v16 = vadd.s32 1, %v843_v5 }
 0x13f   : > { %v2937_v24 = vpop.f32.mrf.mxu0 }
 0x140   : > { %v3072_v14 = vadd.f32 %v2937_v24, %v3061_v19  ;;  %4356 = vst [vmem:[#allocation50_spill] sm:$0xff] %v3168_v16  ;;  %v3195_v31 = vmul.f32 %v2932_v20, %v3149_v22  ;;  %v4362_v54 = vrot.slane %v3149_v22, 7 }
 0x141   : > { %v2951_v33 = vpop.f32.mrf.mxu0 }
 0x142   : > { %v1066_v10 = vrot.slane %v3072_v14, 7  ;;  %v3102_v47 = vadd.f32 %v3061_v19, %v2951_v33  ;;  %v1423_v45 = vrot.slane %v3072_v14, 1  ;;  %4360 = vst [vmem:[#allocation54_spill] sm:$0xff] %v3195_v31  ;;  %v1034_v21 = vmul.f32 %v2932_v20, %v3072_v14 }
 0x143   : > { %v2963_v42 = vpop.f32.mrf.mxu0 }
 0x144   : > { %v1124_v23 = vsel %vm1095_vm0, %v1065_v37, %v1066_v10  ;;  %v1064_v9 = vrot.slane %v3102_v47, 7  ;;  %v3162_v36 = vadd.f32 %v2963_v42, %v3061_v19  ;;  %v1422_v42 = vrot.slane %v3083_v49, 1 }
 0x145   : > { %v2974_v51 = vpop.f32.mrf.mxu0  ;;  %v1323_v18 = vsel %vm1163_vm1, %v1124_v23, 0.0  ;;  %v3187_v23 = vadd.s32 1, %v850_v46  ;;  %v3211_v16 = vmul.f32 %v2932_v20, %v3102_v47  ;;  %vm1549_vm1 = vcmp.lt.s32.totalorder %v2983_v55, 8 }
 0x146   : > { %v3127_v0 = vadd.f32 %v3061_v19, %v2974_v51  ;;  %v1125_v12 = vsel %vm1095_vm0, %v1064_v9, %v1065_v37  ;;  %v1359_v46 = vmul.f32 %v2939_v25, %v1323_v18  ;;  %v1126_v31 = vsel %vm1095_vm0, %v4362_v54, %v1064_v9 }
 0x147   : > { %v2990_v60 = vpop.f32.mrf.mxu0  ;;  %4358 = vst [vmem:[#allocation52_spill] sm:$0xff] %v3187_v23  ;;  %v1481_v23 = vsel %vm1452_vm2, %v1422_v42, %v1423_v45  ;;  %v1322_v37 = vsel %vm1162_vm3, %v1125_v12, 0.0  ;;  %v1426_v54 = vrot.slane %v3162_v36, 1  ;;  %v1321_v29 = vsel %vm1161_vm7, %v1126_v31, 0.0 }
 0x148   : > { %v3139_v63 = vadd.f32 %v2990_v60, %v3061_v19  ;;  %v3157_v60 = vadd.s32 4294967295, %v4353_v48  ;;  %v1067_v58 = vrot.slane %v3127_v0, 7  ;;  %v3234_v12 = vsel %vm1551_vm4, %v1481_v23, 0.0 }
 0x149   : > { %v3002_v6 = vpop.f32.mrf.mxu0  ;;  %vm1550_vm3 = vcmp.lt.s32.totalorder %v2988_v59, 8  ;;  %vm1169_vm4 = vcmp.ge.s32.totalorder %v2998_v2, 0  ;;  %v1357_v38 = vmul.f32 %v2939_v25, %v1321_v29  ;;  %vm1559_vm7 = vcmp.lt.s32.totalorder %v2992_v61, 8 }
 0x14a   : > { %4354 = vst [vmem:[#allocation48_spill] sm:$0xff] %v3157_v60  ;;  %v3175_v48 = vadd.f32 %v3061_v19, %v3002_v6  ;;  %v3191_v6 = vmul.f32 %v2932_v20, %v3083_v49  ;;  %v1069_v49 = vrot.slane %v3162_v36, 7  ;;  %v1123_v14 = vsel %vm1095_vm0, %v1066_v10, %v1067_v58 }
 0x14b   : > { %v3013_v17 = vpop.f32.mrf.mxu0  ;;  %v1424_v60 = vrot.slane %v3127_v0, 1  ;;  %v4294_v9 = vrot.slane %v3139_v63, 1 }
 0x14c   : > { %4359 = vst [vmem:[#allocation53_spill] sm:$0xff] %v3191_v6  ;;  %v1068_v18 = vrot.slane %v3175_v48, 7  ;;  %v1421_v6 = vrot.slane %v3102_v47, 1  ;;  %v3238_v47 = vmul.f32 %v2932_v20, %v3162_v36  ;;  %v1035_v36 = vmul.f32 %v2932_v20, %v3127_v0 }
 0x14d   : > { %v3026_v41 = vpop.f32.mrf.mxu0  ;;  %v1477_v50 = vsel %vm1452_vm2, %v1426_v54, %v4294_v9  ;;  %v1036_v39 = vmul.f32 %v2932_v20, %v3175_v48 }
 0x14e   : > { %4365 = vst [vmem:[#allocation57_spill] sm:$0xff] %v3238_v47  ;;  %v3251_v26 = vadd.f32 %v3061_v19, %v3026_v41  ;;  %v1480_v41 = vsel %vm1452_vm2, %v1423_v45, %v1424_v60  ;;  %v1482_v34 = vsel %vm1452_vm2, %v1421_v6, %v1422_v42  ;;  %v1121_v31 = vsel %vm1095_vm0, %v1068_v18, %v1069_v49 }
 0x14f   : > { %v3037_v62 = vpop.f32.mrf.mxu0  ;;  %v3285_v45 = vadd.f32 %v3013_v17, %v3061_v19  ;;  %v3302_v17 = vsel %vm1552_vm9, %v1480_v41, 0.0  ;;  %v3326_v29 = vsel %vm1555_vm11, %v1477_v50, 0.0  ;;  %vm1558_vm9 = vcmp.lt.s32.totalorder %v3006_v8, 8 }
 0x150   : > { %vm1175_vm11 = vcmp.ge.s32.totalorder %v3018_v28, 0  ;;  %v3411_v56 = vsel %vm1550_vm3, %v1482_v34, 0.0 }
 0x151   : > { %v3050_v15 = vpop.f32.mrf.mxu0 }
 0x153   : > { %v3075_v40 = vpop.f32.mrf.mxu0 }
 0x154   : > { %v3386_v52 = vadd.f32 %v3075_v40, %v3061_v19 }
 0x155   : > { %v3085_v24 = vpop.f32.mrf.mxu0 }
 0x157   : > { %v3105_v4 = vpop.f32.mrf.mxu0 }
 0x159   : > { %v3117_v33 = vpop.f32.mrf.mxu0 }
 0x15b   : > { %v3142_v51 = vpop.f32.mrf.mxu0 }
 0x15c   : > { %4349 = vst [vmem:[#allocation44_spill] sm:$0xff] %v3142_v51  ;;  %v4363_v51 = vrot.slane %v3139_v63, 7 }
 0x15d   : > { %v3164_v57 = vpop.f32.mrf.mxu0 }
 0x15e   : > { %v1120_v27 = vsel %vm1095_vm0, %v1069_v49, %v4363_v51  ;;  %v3245_v51 = vmul.f32 %v2939_v25, %v1322_v37  ;;  %v1122_v37 = vsel %vm1095_vm0, %v1067_v58, %v1068_v18  ;;  %v1038_v18 = vmul.f32 %v2932_v20, %v3139_v63 }
 0x15f   : > { %v3185_v5 = vpop.f32.mrf.mxu0  ;;  %v1325_v42 = vsel %vm1165_vm8, %v1122_v37, 0.0  ;;  %v1326_v37 = vsel %vm1166_vm10, %v1121_v31, 0.0  ;;  %v1428_v31 = vrot.slane %v3251_v26, 1  ;;  %vm1557_vm8 = vcmp.lt.s32.totalorder %v3004_v7, 8  ;;  %v4390_v7 = vld [vmem:[#allocation23_spill] sm:$0xff] }
 0x160   : > { %vm1172_vm10 = vcmp.ge.s32.totalorder %v3009_v13, 0  ;;  %v4392_v13 = vld [vmem:[#allocation12_spill] sm:$0xff] }
 0x161   : > { %v3207_v11 = vpop.f32.mrf.mxu0 }
 0x162   : > { %4361 = vst [vmem:[#allocation55_spill] sm:$0xff] %v3207_v11  ;;  %v3242_v11 = vadd.f32 %v1359_v46, %v1034_v21  ;;  %v1327_v21 = vsel %vm1167_vm6, %v1120_v27, 0.0  ;;  %v1425_v46 = vrot.slane %v3175_v48, 1  ;;  %v1071_v27 = vrot.slane %v3251_v26, 7 }
 0x163   : > { %v3230_v10 = vpop.f32.mrf.mxu0  ;;  %vm1170_vm6 = vcmp.ge.s32.totalorder %v3000_v3, 0 }
 0x164   : > { %4364 = vst [vmem:[#allocation56_spill] sm:$0xff] %v3230_v10  ;;  %v1324_v10 = vsel %vm1164_vm5, %v1123_v14, 0.0  ;;  %v3269_v14 = vadd.f32 %v3037_v62, %v3061_v19  ;;  %v1363_v62 = vmul.f32 %v2939_v25, %v1327_v21  ;;  %vm1556_vm5 = vcmp.lt.s32.totalorder %v2978_v53, 8 }
 0x165   : > { %v3254_v23 = vpop.f32.mrf.mxu0  ;;  %v1360_v58 = vmul.f32 %v2939_v25, %v1324_v10  ;;  %v3295_v10 = vadd.f32 %v3061_v19, %v3050_v15  ;;  %v4367_v15 = vrot.slane %v3149_v22, 1  ;;  %v1478_v30 = vsel %vm1452_vm2, %v1425_v46, %v1426_v54 }
 0x166   : > { %v1479_v41 = vsel %vm1452_vm2, %v1424_v60, %v1425_v46  ;;  %v1074_v9 = vrot.slane %v3269_v14, 7  ;;  %v3332_v54 = vadd.f32 %v1363_v62, %v1038_v18  ;;  %v1073_v60 = vrot.slane %v3285_v45, 7 }
 0x167   : > { %v3272_v0 = vpop.f32.mrf.mxu0  ;;  %v1483_v21 = vsel %vm1452_vm2, %v4367_v15, %v1421_v6  ;;  %v1361_v6 = vmul.f32 %v2939_v25, %v1325_v42  ;;  %v4369_v46 = vrot.slane %v3139_v63, 7  ;;  %v1072_v35 = vrot.slane %v3295_v10, 7 }
 0x168   : > { %4368 = vst [vmem:[#allocation59_spill] sm:$0xff] %v3332_v54  ;;  %v3345_v48 = vsel %vm1553_vm12, %v1479_v41, 0.0  ;;  %v3349_v50 = vsel %vm1554_vm13, %v1478_v30, 0.0  ;;  %v3357_v42 = vmul.f32 %v2932_v20, %v3285_v45  ;;  %v1430_v18 = vrot.slane %v3285_v45, 1 }
 0x169   : > { %v3298_v49 = vpop.f32.mrf.mxu0  ;;  %v1116_v43 = vsel %vm1095_vm0, %v1073_v60, %v1074_v9  ;;  %v4295_v44 = vrot.slane %v3269_v14, 1  ;;  %v3366_v15 = vadd.f32 %v1361_v6, %v1036_v39  ;;  %v3372_v30 = vadd.f32 %v3061_v19, %v3085_v24 }
 0x16a   : > { %4366 = vst [vmem:[#allocation58_spill] sm:$0xff] %v3298_v49  ;;  %v3322_v49 = vadd.f32 %v1360_v58, %v1035_v36  ;;  %v1119_v36 = vsel %vm1095_vm0, %v4369_v46, %v1071_v27  ;;  %v3341_v58 = vmul.f32 %v2939_v25, %v1326_v37  ;;  %4370 = vst [vmem:[#allocation60_spill] sm:$0xff] %v3357_v42  ;;  %v4371_v6 = vrot.slane %v3139_v63, 1 }
 0x16b   : > { %v3320_v47 = vpop.f32.mrf.mxu0  ;;  %v1328_v37 = vsel %vm1168_vm14, %v1119_v36, 0.0  ;;  %v3377_v45 = vadd.f32 %v3105_v4, %v3061_v19  ;;  %v1039_v41 = vmul.f32 %v2932_v20, %v3251_v26  ;;  %v1118_v39 = vsel %vm1095_vm0, %v1071_v27, %v1072_v35 }
 0x16c   : > { %v3389_v24 = vadd.f32 %v1357_v38, %v3211_v16  ;;  %v1476_v4 = vsel %vm1452_vm2, %v4371_v6, %v1428_v31  ;;  %v1331_v46 = vsel %vm1171_vm15, %v1116_v43, 0.0  ;;  %v1117_v26 = vsel %vm1095_vm0, %v1072_v35, %v1073_v60  ;;  %v4375_v6 = vld [vmem:[#allocation13_spill] sm:$0xff] }
 0x16d   : > { %v3353_v62 = vpop.f32.mrf.mxu0  ;;  %v1429_v27 = vrot.slane %v3295_v10, 1  ;;  %v1364_v40 = vmul.f32 %v2939_v25, %v1328_v37  ;;  %v1473_v63 = vsel %vm1452_vm2, %v1430_v18, %v4295_v44  ;;  %v1677_v16 = vsel %vm1549_vm1, %v1483_v21, 0.0  ;;  %v4373_v21 = vld [vmem:[#allocation16_spill] sm:$0xff] }
 0x16e   : > { %v1329_v38 = vsel %vm1169_vm4, %v1118_v39, 0.0  ;;  %v1075_v60 = vrot.slane %v3372_v30, 7  ;;  %v3419_v43 = vadd.f32 %v3061_v19, %v3117_v33  ;;  %vm1174_vm12 = vcmp.ge.s32.totalorder %v3022_v32, 0 }
 0x16f   : > { %v3400_v36 = vpop.f32.mrf.mxu0  ;;  %v3424_v55 = vsel %vm1556_vm5, %v1476_v4, 0.0  ;;  %v1042_v59 = vmul.f32 %v2932_v20, %v3269_v14  ;;  %v1367_v2 = vmul.f32 %v2939_v25, %v1331_v46  ;;  %v1330_v34 = vsel %vm1170_vm6, %v1117_v26, 0.0  ;;  %v4376_v4 = vld [vmem:[#allocation14_spill] sm:$0xff] }
 0x170   : > { %4372 = vst [vmem:[#allocation61_spill] sm:$0xff] %v3400_v36  ;;  %vm1173_vm13 = vcmp.ge.s32.totalorder %v4373_v21, 0  ;;  %v1040_v33 = vmul.f32 %v2932_v20, %v3295_v10  ;;  %v1475_v37 = vsel %vm1452_vm2, %v1428_v31, %v1429_v27  ;;  %v3438_v53 = vmul.f32 %v2932_v20, %v3386_v52 }
 0x171   : > { %v1077_v39 = vrot.slane %v3386_v52, 7  ;;  %vm1560_vm14 = vcmp.lt.s32.totalorder %v4375_v6, 8  ;;  %vm1563_vm15 = vcmp.lt.s32.totalorder %v4376_v4, 8  ;;  %v3443_v3 = vpop.f32.mrf.mxu0  ;;  %v3445_v46 = vadd.f32 %v1364_v40, %v1039_v41 }
 0x172   : > { %4374 = vst [vmem:[#allocation16_spill] sm:$0xff] %v3438_v53  ;;  %4377 = vst [vmem:[#allocation13_spill] sm:$0xff] %v3443_v3  ;;  %v3449_v10 = vsel %vm1559_vm7, %v1473_v63, 0.0  ;;  %v1365_v31 = vmul.f32 %v2939_v25, %v1329_v38  ;;  %v1474_v26 = vsel %vm1452_vm2, %v1429_v27, %v1430_v18  ;;  %v3455_v44 = vmul.f32 %v2939_v25, %v1330_v34  ;;  %v4382_v63 = vld [vmem:[#allocation15_spill] sm:$0xff]  ;;  %v4384_v34 = vld [vmem:[#allocation17_spill] sm:$0xff] }
 0x173   : > { %4378 = vst [vmem:[#allocation14_spill] sm:$0xff] %v3445_v46  ;;  %4379 = vst [vmem:[#allocation62_spill] sm:$0xff] %v3449_v10  ;;  %v1115_v35 = vsel %vm1095_vm0, %v1074_v9, %v1075_v60  ;;  %v4381_v41 = vrot.slane %v3377_v45, 7  ;;  %v1076_v40 = vrot.slane %v3419_v43, 7  ;;  %vm1561_vm1 = vcmp.lt.s32.totalorder %v4382_v63, 8  ;;  %v4385_v53 = vld [vmem:[#allocation18_spill] sm:$0xff]  ;;  %v3491_v3 = vpop.f32.mrf.mxu0 }
 0x174   : > { %4380 = vst [vmem:[#allocation63_spill] sm:$0xff] %v3455_v44  ;;  %v3467_v38 = vadd.f32 %v1367_v2, %v1042_v59  ;;  %v3471_v18 = vsel %vm1557_vm8, %v1475_v37, 0.0  ;;  %v1432_v27 = vrot.slane %v3372_v30, 1  ;;  %vm1562_vm3 = vcmp.lt.s32.totalorder %v4384_v34, 8  ;;  %v4386_v37 = vld [vmem:[#allocation20_spill] sm:$0xff]  ;;  %4387 = vst [vmem:[#allocation17_spill] sm:$0xff] %v3491_v3 }
 0x175   : > { %v1112_v61 = vsel %vm1095_vm0, %v1077_v39, %v4381_v41  ;;  %v3477_v9 = vadd.f32 %v3061_v19, %v3164_v57  ;;  %vm1176_vm4 = vcmp.ge.s32.totalorder %v4385_v53, 0  ;;  %v3482_v41 = vsel %vm1558_vm9, %v1474_v26, 0.0  ;;  %v4389_v26 = vld [vmem:[#allocation55_spill] sm:$0xff]  ;;  %v3531_v36 = vpop.f32.mrf.mxu0 }
 0x176   : > { %4383 = vst [vmem:[#allocation15_spill] sm:$0xff] %v3467_v38  ;;  %v1434_v59 = vrot.slane %v3386_v52, 1  ;;  %v3488_v2 = vadd.f32 %v3185_v5, %v3061_v19  ;;  %vm1179_vm5 = vcmp.ge.s32.totalorder %v4386_v37, 0  ;;  %v3493_v57 = vadd.f32 %v1365_v31, %v1040_v33  ;;  %v4391_v33 = vld [vmem:[#allocation44_spill] sm:$0xff]  ;;  %4396 = vst [vmem:[#allocation20_spill] sm:$0xff] %v3531_v36  ;;  %v4407_v37 = vld [vmem:[#allocation26_spill] sm:$0xff] }
 0x177   : > { %v1332_v38 = vsel %vm1172_vm10, %v1115_v35, 0.0  ;;  %v1335_v8 = vsel %vm1175_vm11, %v1112_v61, 0.0  ;;  %v3501_v52 = vadd.f32 %v3061_v19, %v4389_v26  ;;  %vm1177_vm6 = vcmp.ge.s32.totalorder %v4390_v7, 0 }
 0x178   : > { %4388 = vst [vmem:[#allocation18_spill] sm:$0xff] %v3493_v57  ;;  %v1113_v5 = vsel %vm1095_vm0, %v1076_v40, %v1077_v39  ;;  %v1433_v10 = vrot.slane %v3419_v43, 1  ;;  %v3509_v31 = vadd.f32 %v4391_v33, %v3061_v19  ;;  %v3512_v35 = vmul.f32 %v4392_v13, %v1677_v16  ;;  %v4402_v57 = vld [vmem:[#allocation25_spill] sm:$0xff] }
 0x179   : > { %v1043_v28 = vmul.f32 %v2932_v20, %v3372_v30  ;;  %v4393_v61 = vrot.slane %v3269_v14, 1  ;;  %v1114_v39 = vsel %vm1095_vm0, %v1075_v60, %v1076_v40  ;;  %v1079_v3 = vrot.slane %v3477_v9, 7  ;;  %v4395_v14 = vld [vmem:[#allocation22_spill] sm:$0xff] }
 0x17a   : > { %v1368_v44 = vmul.f32 %v2939_v25, %v1332_v38  ;;  %v1371_v33 = vmul.f32 %v2939_v25, %v1335_v8  ;;  %v4394_v16 = vrot.slane %v3377_v45, 1  ;;  %vm1178_vm7 = vcmp.ge.s32.totalorder %v4395_v14, 0  ;;  %v4397_v8 = vld [vmem:[#allocation19_spill] sm:$0xff] }
 0x17b   : > { %v1472_v26 = vsel %vm1452_vm2, %v4393_v61, %v1432_v27  ;;  %v1046_v60 = vmul.f32 %v2932_v20, %v3377_v45  ;;  %v1044_v40 = vmul.f32 %v2932_v20, %v3419_v43  ;;  %v1334_v38 = vsel %vm1174_vm12, %v1113_v5, 0.0  ;;  %v4399_v43 = vld [vmem:[#allocation21_spill] sm:$0xff] }
 0x17c   : > { %v1469_v42 = vsel %vm1452_vm2, %v1434_v59, %v4394_v16  ;;  %vm1564_vm8 = vcmp.lt.s32.totalorder %v4397_v8, 8  ;;  %v1080_v61 = vrot.slane %v3501_v52, 7  ;;  %v1333_v16 = vsel %vm1173_vm13, %v1114_v39, 0.0 }
 0x17d   : > { %v1471_v30 = vsel %vm1452_vm2, %v1432_v27, %v1433_v10  ;;  %v3547_v36 = vmul.f32 %v2932_v20, %v3509_v31  ;;  %v1081_v46 = vrot.slane %v3509_v31, 7  ;;  %vm1567_vm9 = vcmp.lt.s32.totalorder %v4399_v43, 8 }
 0x17e   : > { %v3553_v32 = vsel %vm1560_vm14, %v1472_v26, 0.0  ;;  %v3557_v5 = vsel %vm1563_vm15, %v1469_v42, 0.0  ;;  %v1470_v21 = vsel %vm1452_vm2, %v1433_v10, %v1434_v59  ;;  %v4400_v27 = vrot.slane %v3377_v45, 7  ;;  %v2368_v59 = vpop.f32.mrf.mxu0 }
 0x17f   : > { %4398 = vst [vmem:[#allocation55_spill] sm:$0xff] %v3547_v36  ;;  %v4401_v36 = vld [vmem:[#allocation24_spill] sm:$0xff]  ;;  %vm1566_vm11 = vcmp.lt.s32.totalorder %v4402_v57, 8  ;;  %v3567_v54 = vadd.f32 %v1368_v44, %v1043_v28  ;;  %v3569_v6 = vadd.f32 %v1371_v33, %v1046_v60  ;;  %v3572_v4 = vmul.f32 %v2939_v25, %v1334_v38  ;;  %v4412_v57 = vld [vmem:[#allocation27_spill] sm:$0xff] }
 0x180   : > { %v1111_v39 = vsel %vm1095_vm0, %v4400_v27, %v1079_v3  ;;  %vm1565_vm10 = vcmp.lt.s32.totalorder %v4401_v36, 8  ;;  %v4404_v42 = vrot.slane %v3488_v2, 7  ;;  %v1369_v26 = vmul.f32 %v2939_v25, %v1333_v16  ;;  %v4405_v33 = vld [vmem:[#allocation48_spill] sm:$0xff] }
 0x181   : > { %4403 = vst [vmem:[#allocation23_spill] sm:$0xff] %v3569_v6  ;;  %v3581_v27 = vsel %vm1561_vm1, %v1471_v30, 0.0  ;;  %v1436_v44 = vrot.slane %v3477_v9, 1  ;;  %v1110_v28 = vsel %vm1095_vm0, %v1079_v3, %v1080_v61  ;;  %vm1160_vm12 = vcmp.ge.s32.totalorder %v4405_v33, 0 }
 0x182   : > { %v1108_v10 = vsel %vm1095_vm0, %v1081_v46, %v4404_v42  ;;  %v3589_v60 = vsel %vm1562_vm3, %v1470_v21, 0.0  ;;  %v1438_v38 = vrot.slane %v3509_v31, 1  ;;  %v1336_v16 = vsel %vm1176_vm4, %v1111_v39, 0.0  ;;  %v4406_v31 = vld [vmem:[#allocation56_spill] sm:$0xff] }
 0x183   : > { %v4298_v63 = vrot.slane %v3488_v2, 1  ;;  %v1047_v30 = vmul.f32 %v2932_v20, %v3477_v9  ;;  %v1339_v42 = vsel %vm1179_vm5, %v1108_v10, 0.0  ;;  %v1437_v3 = vrot.slane %v3501_v52, 1 }
 0x184   : > { %v3601_v6 = vadd.f32 %v2368_v59, %v3061_v19  ;;  %v1109_v34 = vsel %vm1095_vm0, %v1080_v61, %v1081_v46  ;;  %v1337_v53 = vsel %vm1177_vm6, %v1110_v28, 0.0  ;;  %v3609_v21 = vadd.f32 %v4406_v31, %v3061_v19 }
 0x185   : > { %v3613_v9 = vadd.f32 %v3061_v19, %v3254_v23  ;;  %vm1180_vm13 = vcmp.ge.s32.totalorder %v4407_v37, 0  ;;  %v3616_v39 = vadd.f32 %v1369_v26, %v1044_v40  ;;  %v1372_v10 = vmul.f32 %v2939_v25, %v1336_v16  ;;  %v4418_v37 = vld [vmem:[#allocation31_spill] sm:$0xff] }
 0x186   : > { %v4408_v59 = vrot.slane %v3377_v45, 1  ;;  %v4296_v7 = vrot.slane %v3601_v6, 7  ;;  %v1050_v61 = vmul.f32 %v2932_v20, %v3488_v2  ;;  %v1375_v28 = vmul.f32 %v2939_v25, %v1339_v42 }
 0x187   : > { %v1465_v23 = vsel %vm1452_vm2, %v1438_v38, %v4298_v63  ;;  %v3633_v40 = vadd.f32 %v3272_v0, %v3061_v19  ;;  %v1338_v45 = vsel %vm1178_vm7, %v1109_v34, 0.0  ;;  %v1373_v26 = vmul.f32 %v2939_v25, %v1337_v53  ;;  %v4409_v34 = vld [vmem:[#allocation28_spill] sm:$0xff] }
 0x188   : > { %v1468_v46 = vsel %vm1452_vm2, %v4408_v59, %v1436_v44  ;;  %v1466_v16 = vsel %vm1452_vm2, %v1437_v3, %v1438_v38  ;;  %v1467_v42 = vsel %vm1452_vm2, %v1436_v44, %v1437_v3  ;;  %v1048_v59 = vmul.f32 %v2932_v20, %v3501_v52 }
 0x189   : > { %v3644_v31 = vsel %vm1564_vm8, %v1468_v46, 0.0  ;;  %v3650_v0 = vmul.f32 %v2932_v20, %v3609_v21  ;;  %v4297_v14 = vrot.slane %v3613_v9, 7  ;;  %vm1183_vm14 = vcmp.ge.s32.totalorder %v4409_v34, 0 }
 0x18a   : > { %v3654_v53 = vadd.f32 %v1372_v10, %v1047_v30  ;;  %v3658_v44 = vsel %vm1567_vm9, %v1465_v23, 0.0  ;;  %v4300_v8 = vrot.slane %v3609_v21, 7  ;;  %v4410_v38 = vrot.slane %v3149_v22, 7 }
 0x18b   : > { %v3667_v3 = vadd.f32 %v1375_v28, %v1050_v61  ;;  %v3670_v46 = vmul.f32 %v2939_v25, %v1338_v45  ;;  %v3674_v30 = vsel %vm1565_vm10, %v1467_v42, 0.0  ;;  %v3678_v43 = vsel %vm1566_vm11, %v1466_v16, 0.0  ;;  %v4413_v16 = vld [vmem:[#allocation53_spill] sm:$0xff] }
 0x18c   : > { %v1127_v52 = vsel %vm1095_vm0, %v4296_v7, %v4410_v38  ;;  %v3680_v10 = vadd.f32 %v1373_v26, %v1048_v59  ;;  %v3685_v38 = vmul.f32 %v2932_v20, %v3613_v9  ;;  %v4411_v36 = vrot.slane %v3488_v2, 7  ;;  %v4414_v7 = vld [vmem:[#allocation29_spill] sm:$0xff] }
 0x18d   : > { %vm1568_vm15 = vcmp.lt.s32.totalorder %v4412_v57, 8  ;;  %v4299_v45 = vrot.slane %v3633_v40, 7  ;;  %v1320_v26 = vsel %vm1160_vm12, %v1127_v52, 0.0  ;;  %v1390_v42 = vadd.f32 %v3245_v51, %v4413_v16  ;;  %v4415_v16 = vld [vmem:[#allocation54_spill] sm:$0xff] }
 0x18e   : > { %v1107_v28 = vsel %vm1095_vm0, %v4411_v36, %v4297_v14  ;;  %v1054_v59 = vmul.f32 %v2932_v20, %v3633_v40  ;;  %vm1571_vm1 = vcmp.lt.s32.totalorder %v4414_v7, 8  ;;  %v1356_v23 = vmul.f32 %v2939_v25, %v1320_v26 }
 0x18f   : > { %v1714_v36 = vmul.f32 %v4392_v13, %v3411_v56  ;;  %v1716_v14 = vmul.f32 %v4392_v13, %v3302_v17  ;;  %v1715_v33 = vmul.f32 %v4392_v13, %v3234_v12  ;;  %v1717_v51 = vmul.f32 %v4392_v13, %v3345_v48  ;;  %v4416_v48 = vld [vmem:[#allocation58_spill] sm:$0xff] }
 0x190   : > { %v1718_v52 = vmul.f32 %v4392_v13, %v3349_v50  ;;  %v1340_v26 = vsel %vm1180_vm13, %v1107_v28, 0.0  ;;  %v1388_v61 = vadd.f32 %v1356_v23, %v4415_v16  ;;  %v1104_v12 = vsel %vm1095_vm0, %v4300_v8, %v4299_v45  ;;  %v4417_v50 = vld [vmem:[#allocation30_spill] sm:$0xff] }
 0x191   : > { %v1746_v56 = vadd.f32 %v1714_v36, %v3389_v24  ;;  %v1748_v17 = vadd.f32 %v1716_v14, %v3242_v11  ;;  %v566_v63 = vadd.f32 %v3061_v19, %v4416_v48  ;;  %vm1181_vm3 = vcmp.ge.s32.totalorder %v4417_v50, 0  ;;  %v3733_v24 = vld [vmem:[%s4246_s4] ss:$0 sm:$0xff] }
 0x192   : > { %vm1182_vm4 = vcmp.ge.s32.totalorder %v4418_v37, 0  ;;  %v1747_v11 = vadd.f32 %v1715_v33, %v1390_v42  ;;  %v1750_v14 = vadd.f32 %v1718_v52, %v3366_v15  ;;  %v4419_v23 = vrot.slane %v3613_v9, 1  ;;  %v4435_v37 = vld [vmem:[#allocation60_spill] sm:$0xff] }
 0x193   : > { %v4420_v28 = vrot.slane %v3488_v2, 1  ;;  %v3744_v16 = vadd.f32 %v3320_v47, %v3061_v19  ;;  %v1745_v48 = vadd.f32 %v3512_v35, %v1388_v61  ;;  %v1749_v45 = vadd.f32 %v1717_v51, %v3322_v49 }
 0x194   : > { %v1376_v8 = vmul.f32 %v2939_v25, %v1340_v26  ;;  %v3751_v15 = vadd.f32 %v3061_v19, %v3353_v62  ;;  %v1787_v42 = vadd.f32 %v3733_v24, %v1748_v17  ;;  %v1720_v2 = vmul.f32 %v4392_v13, %v3424_v55  ;;  %v4423_v55 = vld [vmem:[#allocation57_spill] sm:$0xff]  ;;  %v4424_v17 = vld [vmem:[#allocation32_spill] sm:$0xff] }
 0x195   : > { %v1464_v36 = vsel %vm1452_vm2, %v4420_v28, %v4419_v23  ;;  %v1343_v33 = vsel %vm1183_vm14, %v1104_v12, 0.0  ;;  %v1784_v47 = vadd.f32 %v3733_v24, %v1745_v48  ;;  %v1785_v35 = vadd.f32 %v3733_v24, %v1746_v56  ;;  %v4425_v48 = vld [vmem:[#allocation33_spill] sm:$0xff] }
 0x196   : > { %v1789_v49 = vadd.f32 %v3733_v24, %v1750_v14  ;;  %v4421_v61 = vrot.slane %v3633_v40, 1  ;;  %v4422_v51 = vrot.slane %v3609_v21, 1  ;;  %v1084_v52 = vrot.slane %v566_v63, 7 }
 0x197   : > { %v1786_v26 = vadd.f32 %v3733_v24, %v1747_v11  ;;  %v1394_v34 = vadd.f32 %v3341_v58, %v4423_v55  ;;  %vm1569_vm5 = vcmp.lt.s32.totalorder %v4424_v17, 8  ;;  %v1816_v12 = vpack.c.bf16 %v1785_v35, %v1784_v47  ;;  %v4426_v58 = vld [vmem:[#allocation59_spill] sm:$0xff]  ;;  %v4427_v35 = vld [vmem:[#allocation18_spill] sm:$0xff] }
 0x198   : > { %v1461_v62 = vsel %vm1452_vm2, %v4422_v51, %v4421_v61  ;;  %v1788_v56 = vadd.f32 %v3733_v24, %v1749_v45  ;;  %v1721_v14 = vmul.f32 %v4392_v13, %v3471_v18  ;;  %v1722_v23 = vmul.f32 %v4392_v13, %v3482_v41 }
 0x199   : > { %v1379_v28 = vmul.f32 %v2939_v25, %v1343_v33  ;;  %vm1570_vm6 = vcmp.lt.s32.totalorder %v4425_v48, 8  ;;  %v1817_v61 = vpack.c.bf16 %v1787_v42, %v1786_v26  ;;  %v1719_v11 = vmul.f32 %v4392_v13, %v3326_v29  ;;  %2385 = vmatprep.mubr.bf16.mxu1 %v1816_v12  ;;  %v4431_v26 = vld [vmem:[#allocation14_spill] sm:$0xff] }
 0x19a   : > { %v1752_v51 = vadd.f32 %v1720_v2, %v4426_v58  ;;  %v3783_v47 = vsel %vm1568_vm15, %v1464_v36, 0.0  ;;  %v1441_v45 = vrot.slane %v566_v63, 1  ;;  %v1818_v18 = vpack.c.bf16 %v1789_v49, %v1788_v56  ;;  %v4436_v58 = vld [vmem:[#allocation63_spill] sm:$0xff] }
 0x19b   : > { %v1754_v55 = vadd.f32 %v1722_v23, %v4427_v35  ;;  %v3788_v41 = vsel %vm1571_vm1, %v1461_v62, 0.0  ;;  %v4428_v42 = vrot.slane %v3609_v21, 7  ;;  %v4429_v2 = vrot.slane %v3613_v9, 7  ;;  %2386 = vmatmul.mubr.bf16.vlgmr.msra.gmra.mxu1 %v1817_v61  ;;  %v4430_v62 = vld [vmem:[#allocation35_spill] sm:$0xff]  ;;  %v4438_v35 = vld [vmem:[#allocation36_spill] sm:$0xff] }
 0x19c   : > { %v1751_v36 = vadd.f32 %v1719_v11, %v1394_v34  ;;  %v3799_v33 = vadd.f32 %v1376_v8, %v3685_v38  ;;  %v1052_v49 = vmul.f32 %v2932_v20, %v566_v63  ;;  %v3804_v7 = vmul.f32 %v2932_v20, %v3744_v16  ;;  %2389 = vmatprep.mubr.bf16.mxu1 %v1818_v18  ;;  %v4437_v18 = vld [vmem:[#allocation34_spill] sm:$0xff] }
 0x19d   : > { %v1105_v29 = vsel %vm1095_vm0, %v1084_v52, %v4428_v42  ;;  %v1106_v57 = vsel %vm1095_vm0, %v4429_v2, %v1084_v52  ;;  %vm1184_vm7 = vcmp.ge.s32.totalorder %v4430_v62, 0  ;;  %v1753_v12 = vadd.f32 %v1721_v14, %v4431_v26  ;;  %v4439_v2 = vld [vmem:[#allocation62_spill] sm:$0xff] }
 0x19e   : > { %v3808_v56 = vadd.f32 %v1379_v28, %v1054_v59  ;;  %v4303_v52 = vrot.slane %v3744_v16, 7  ;;  %v1791_v34 = vadd.f32 %v3733_v24, %v1752_v51  ;;  %v1724_v8 = vmul.f32 %v4392_v13, %v3553_v32  ;;  %v4434_v32 = vld [vmem:[#allocation61_spill] sm:$0xff] }
 0x19f   : > { %v1341_v63 = vsel %vm1181_vm3, %v1106_v57, 0.0  ;;  %v1342_v38 = vsel %vm1182_vm4, %v1105_v29, 0.0  ;;  %v4432_v23 = vrot.slane %v3609_v21, 1  ;;  %v1793_v59 = vadd.f32 %v3733_v24, %v1754_v55 }
 0x1a0   : > { %v4433_v28 = vrot.slane %v3613_v9, 1  ;;  %v3829_v11 = vadd.f32 %v4434_v32, %v3061_v19  ;;  %v1790_v50 = vadd.f32 %v3733_v24, %v1751_v36  ;;  %v1398_v51 = vadd.f32 %v4436_v58, %v4435_v37  ;;  %v4440_v36 = vld [vmem:[#allocation15_spill] sm:$0xff]  ;;  %v4443_v37 = vld [vmem:[#allocation38_spill] sm:$0xff] }
 0x1a1   : > { %v1462_v14 = vsel %vm1452_vm2, %v1441_v45, %v4432_v23  ;;  %v1087_v21 = vrot.slane %v3751_v15, 7  ;;  %vm1572_vm8 = vcmp.lt.s32.totalorder %v4437_v18, 8  ;;  %vm1187_vm9 = vcmp.ge.s32.totalorder %v4438_v35, 0 }
 0x1a2   : > { %v1463_v61 = vsel %vm1452_vm2, %v4433_v28, %v1441_v45  ;;  %v1792_v9 = vadd.f32 %v3733_v24, %v1753_v12  ;;  %v1725_v45 = vmul.f32 %v4392_v13, %v3581_v27  ;;  %v1726_v55 = vmul.f32 %v4392_v13, %v3589_v60 }
 0x1a3   : > { %v1377_v42 = vmul.f32 %v2939_v25, %v1341_v63  ;;  %v1819_v29 = vpack.c.bf16 %v1791_v34, %v1790_v50  ;;  %v1723_v57 = vmul.f32 %v4392_v13, %v4439_v2  ;;  %v1756_v26 = vadd.f32 %v1724_v8, %v4440_v36  ;;  %v4447_v2 = vld [vmem:[#allocation16_spill] sm:$0xff]  ;;  %v4448_v36 = vld [vmem:[#allocation37_spill] sm:$0xff] }
 0x1a4   : > { %v1446_v23 = vrot.slane %v3744_v16, 1  ;;  %v4302_v28 = vrot.slane %v3751_v15, 1  ;;  %v1820_v32 = vpack.c.bf16 %v1793_v59, %v1792_v9  ;;  %v1758_v12 = vadd.f32 %v1726_v55, %v3616_v39  ;;  %v4442_v59 = vld [vmem:[#allocation13_spill] sm:$0xff] }
 0x1a5   : > { %v3850_v27 = vmul.f32 %v2939_v25, %v1342_v38  ;;  %v3854_v60 = vsel %vm1569_vm5, %v1463_v61, 0.0  ;;  %v4301_v34 = vrot.slane %v3829_v11, 7  ;;  %2390 = vmatmul.mubr.bf16.gmra.mxu1 %v1819_v29  ;;  %v1755_v63 = vadd.f32 %v1723_v57, %v1398_v51 }
 0x1a6   : > { %v3859_v8 = vsel %vm1570_vm6, %v1462_v14, 0.0  ;;  %v4441_v50 = vrot.slane %v3633_v40, 7  ;;  %v582_v38 = vadd.f32 %v3061_v19, %v4442_v59  ;;  %vm1185_vm10 = vcmp.ge.s32.totalorder %v4443_v37, 0  ;;  %2393 = vmatprep.mubr.bf16.mxu1 %v1820_v32  ;;  %v4449_v32 = vld [vmem:[#allocation39_spill] sm:$0xff]  ;;  %v4450_v59 = vld [vmem:[#allocation40_spill] sm:$0xff] }
 0x1a7   : > { %v1757_v17 = vadd.f32 %v1725_v45, %v3567_v54  ;;  %v3869_v61 = vadd.f32 %v1377_v42, %v1052_v49  ;;  %v3873_v48 = vmul.f32 %v2932_v20, %v3751_v15  ;;  %v1795_v14 = vadd.f32 %v3733_v24, %v1756_v26  ;;  %v4445_v54 = vld [vmem:[#allocation17_spill] sm:$0xff]  ;;  %v4446_v45 = vld [vmem:[#allocation20_spill] sm:$0xff] }
 0x1a8   : > { %v1103_v39 = vsel %vm1095_vm0, %v4441_v50, %v1087_v21  ;;  %v1728_v58 = vmul.f32 %v4392_v13, %v3644_v31  ;;  %v4444_v51 = vrot.slane %v3633_v40, 1  ;;  %v3886_v49 = vadd.f32 %v4445_v54, %v3061_v19 }
 0x1a9   : > { %v3890_v55 = vadd.f32 %v3061_v19, %v4446_v45  ;;  %v1797_v42 = vadd.f32 %v3733_v24, %v1758_v12  ;;  %v1344_v31 = vsel %vm1184_vm7, %v1103_v39, 0.0  ;;  %v1100_v40 = vsel %vm1095_vm0, %v4303_v52, %v4301_v34  ;;  %v4452_v45 = vld [vmem:[#allocation23_spill] sm:$0xff] }
 0x1aa   : > { %v1460_v9 = vsel %vm1452_vm2, %v4444_v51, %v4302_v28  ;;  %v1794_v29 = vadd.f32 %v3733_v24, %v1755_v63  ;;  %v1402_v57 = vadd.f32 %v3572_v4, %v4447_v2  ;;  %vm1575_vm11 = vcmp.lt.s32.totalorder %v4448_v36, 8  ;;  %v4451_v63 = vld [vmem:[#allocation41_spill] sm:$0xff]  ;;  %v597_v4 = vpop.f32.mrf.mxu0 }
 0x1ab   : > { %v1088_v26 = vrot.slane %v582_v38, 7  ;;  %vm1186_vm12 = vcmp.ge.s32.totalorder %v4449_v32, 0  ;;  %v1796_v62 = vadd.f32 %v3733_v24, %v1757_v17  ;;  %v1729_v12 = vmul.f32 %v4392_v13, %v3674_v30 }
 0x1ac   : > { %v1730_v50 = vmul.f32 %v4392_v13, %v3678_v43  ;;  %v1447_v39 = vrot.slane %v3829_v11, 1  ;;  %vm1573_vm13 = vcmp.lt.s32.totalorder %v4450_v59, 8  ;;  %vm1574_vm14 = vcmp.lt.s32.totalorder %v4451_v63, 8 }
 0x1ad   : > { %v1821_v51 = vpack.c.bf16 %v1795_v14, %v1794_v29  ;;  %v1727_v54 = vmul.f32 %v4392_v13, %v3557_v5  ;;  %v1760_v2 = vadd.f32 %v1728_v58, %v4452_v45  ;;  %v1058_v17 = vmul.f32 %v2932_v20, %v3829_v11 }
 0x1ae   : > { %v1445_v30 = vrot.slane %v582_v38, 1  ;;  %v1822_v34 = vpack.c.bf16 %v1797_v42, %v1796_v62  ;;  %v1762_v43 = vadd.f32 %v1730_v50, %v3680_v10  ;;  %v1700_v28 = vsel %vm1572_vm8, %v1460_v9, 0.0  ;;  %v4453_v42 = vld [vmem:[#allocation51_spill] sm:$0xff]  ;;  %v4458_v50 = vld [vmem:[#allocation42_spill] sm:$0xff] }
 0x1af   : > { %v1347_v52 = vsel %vm1187_vm9, %v1100_v40, 0.0  ;;  %v1056_v14 = vmul.f32 %v2932_v20, %v582_v38  ;;  %2394 = vmatmul.mubr.bf16.gmra.mxu1 %v1821_v51  ;;  %v1759_v29 = vadd.f32 %v1727_v54, %v1402_v57  ;;  %v1380_v5 = vmul.f32 %v2939_v25, %v1344_v31  ;;  %v4454_v38 = vld [vmem:[#allocation43_spill] sm:$0xff] }
 0x1b0   : > { %v1102_v58 = vsel %vm1095_vm0, %v1087_v21, %v1088_v26  ;;  %v3929_v45 = vadd.f32 %v3061_v19, %v597_v4  ;;  %vm1189_vm15 = vcmp.ge.s32.totalorder %v4453_v42, 0  ;;  %2397 = vmatprep.mubr.bf16.mxu1 %v1822_v34  ;;  %v1761_v10 = vadd.f32 %v1729_v12, %v3654_v53  ;;  %v4457_v12 = vld [vmem:[#allocation55_spill] sm:$0xff] }
 0x1b1   : > { %v1457_v18 = vsel %vm1452_vm2, %v1446_v23, %v1447_v39  ;;  %v1093_v35 = vrot.slane %v3886_v49, 7  ;;  %vm1576_vm1 = vcmp.lt.s32.totalorder %v4454_v38, 8  ;;  %v1799_v21 = vadd.f32 %v3733_v24, %v1760_v2 }
 0x1b2   : > { %v1732_v19 = vmul.f32 %v4392_v13, %v3783_v47  ;;  %v1383_v34 = vmul.f32 %v2939_v25, %v1347_v52  ;;  %v4455_v53 = vrot.slane %v3744_v16, 7  ;;  %v1458_v31 = vsel %vm1452_vm2, %v1445_v30, %v1446_v23 }
 0x1b3   : > { %v1801_v40 = vadd.f32 %v3733_v24, %v1762_v43  ;;  %v1345_v57 = vsel %vm1185_vm10, %v1102_v58, 0.0  ;;  %v4456_v62 = vrot.slane %v3751_v15, 1  ;;  %v1798_v52 = vadd.f32 %v3733_v24, %v1759_v29  ;;  %v4459_v43 = vld [vmem:[#allocation50_spill] sm:$0xff]  ;;  %v4460_v29 = vld [vmem:[#allocation52_spill] sm:$0xff] }
 0x1b4   : > { %v1101_v9 = vsel %vm1095_vm0, %v1088_v26, %v4455_v53  ;;  %v1406_v26 = vadd.f32 %v3670_v46, %v4457_v12  ;;  %vm1188_vm3 = vcmp.ge.s32.totalorder %v4458_v50, 0  ;;  %v1092_v16 = vrot.slane %v3929_v45, 7 }
 0x1b5   : > { %v1459_v47 = vsel %vm1452_vm2, %v4456_v62, %v1445_v30  ;;  %v1800_v23 = vadd.f32 %v3733_v24, %v1761_v10  ;;  %v1733_v37 = vmul.f32 %v4392_v13, %v3854_v60  ;;  %v1734_v15 = vmul.f32 %v4392_v13, %v3859_v8 }
 0x1b6   : > { %v1448_v4 = vrot.slane %v3890_v55, 1  ;;  %v1823_v51 = vpack.c.bf16 %v1799_v21, %v1798_v52  ;;  %v1731_v54 = vmul.f32 %v4392_v13, %v3658_v44  ;;  %v1764_v46 = vadd.f32 %v1732_v19, %v3667_v3  ;;  %v4461_v3 = vld [vmem:[#allocation49_spill] sm:$0xff] }
 0x1b7   : > { %v1381_v2 = vmul.f32 %v2939_v25, %v1345_v57  ;;  %v1091_v30 = vrot.slane %v3890_v55, 7  ;;  %vm1577_vm4 = vcmp.lt.s32.totalorder %v4459_v43, 8  ;;  %vm1578_vm5 = vcmp.lt.s32.totalorder %v4460_v29, 8 }
 0x1b8   : > { %v1824_v60 = vpack.c.bf16 %v1801_v40, %v1800_v23  ;;  %v1766_v58 = vadd.f32 %v1734_v15, %v3869_v61  ;;  %v1412_v8 = vadd.f32 %v1380_v5, %v3873_v48  ;;  %v3982_v10 = vsel %vm1575_vm11, %v1457_v18, 0.0  ;;  %2398 = vmatmul.mubr.bf16.gmra.mxu1 %v1823_v51  ;;  %v4462_v61 = vld [vmem:[#allocation45_spill] sm:$0xff] }
 0x1b9   : > { %v1346_v44 = vsel %vm1186_vm12, %v1101_v9, 0.0  ;;  %vm1190_vm6 = vcmp.ge.s32.totalorder %v4461_v3, 0  ;;  %v1763_v21 = vadd.f32 %v1731_v54, %v1406_v26  ;;  %v1701_v19 = vsel %vm1573_vm13, %v1459_v47, 0.0 }
 0x1ba   : > { %v1702_v53 = vsel %vm1574_vm14, %v1458_v31, 0.0  ;;  %vm1191_vm7 = vcmp.ge.s32.totalorder %v4462_v61, 0  ;;  %v1098_v48 = vsel %vm1095_vm0, %v1091_v30, %v1092_v16  ;;  %2401 = vmatprep.mubr.bf16.mxu1 %v1824_v60  ;;  %v1765_v36 = vadd.f32 %v1733_v37, %v3799_v33 }
 0x1bb   : > { %v1456_v32 = vsel %vm1452_vm2, %v1447_v39, %v1448_v4  ;;  %v1449_v5 = vrot.slane %v3929_v45, 1  ;;  %v1803_v59 = vadd.f32 %v3733_v24, %v1764_v46  ;;  %v1736_v63 = vmul.f32 %v4392_v13, %v1700_v28 }
 0x1bc   : > { %v1415_v18 = vadd.f32 %v1383_v34, %v1058_v17  ;;  %v1413_v9 = vadd.f32 %v1381_v2, %v1056_v14  ;;  %v1450_v31 = vrot.slane %v3886_v49, 1  ;;  %v1805_v40 = vadd.f32 %v3733_v24, %v1766_v58  ;;  %v4464_v34 = vld [vmem:[#allocation46_spill] sm:$0xff] }
 0x1bd   : > { %v4463_v57 = vrot.slane %v3829_v11, 7  ;;  %v1349_v39 = vsel %vm1189_vm15, %v1098_v48, 0.0  ;;  %v1802_v62 = vadd.f32 %v3733_v24, %v1763_v21  ;;  %v1410_v47 = vadd.f32 %v3850_v27, %v3650_v0 }
 0x1be   : > { %v1704_v28 = vsel %vm1576_vm1, %v1456_v32, 0.0  ;;  %v1804_v17 = vadd.f32 %v3733_v24, %v1765_v36  ;;  %v1737_v14 = vmul.f32 %v4392_v13, %v1701_v19  ;;  %v1738_v11 = vmul.f32 %v4392_v13, %v1702_v53 }
 0x1bf   : > { %v1099_v33 = vsel %vm1095_vm0, %v4463_v57, %v1091_v30  ;;  %vm1579_vm8 = vcmp.lt.s32.totalorder %v4464_v34, 8  ;;  %v1454_v42 = vsel %vm1452_vm2, %v1449_v5, %v1450_v31  ;;  %v1825_v52 = vpack.c.bf16 %v1803_v59, %v1802_v62  ;;  %v4466_v59 = vld [vmem:[#allocation47_spill] sm:$0xff] }
 0x1c0   : > { %v1735_v12 = vmul.f32 %v4392_v13, %v3788_v41  ;;  %v1768_v0 = vadd.f32 %v1736_v63, %v3808_v56  ;;  %v1385_v27 = vmul.f32 %v2939_v25, %v1349_v39  ;;  %v1455_v38 = vsel %vm1452_vm2, %v1448_v4, %v1449_v5 }
 0x1c1   : > { %v1826_v26 = vpack.c.bf16 %v1805_v40, %v1804_v17  ;;  %v1770_v23 = vadd.f32 %v1738_v11, %v1413_v9  ;;  %v1382_v37 = vmul.f32 %v2939_v25, %v1346_v44  ;;  %v1348_v15 = vsel %vm1188_vm3, %v1099_v33, 0.0  ;;  %2402 = vmatmul.mubr.bf16.gmra.mxu1 %v1825_v52 }
 0x1c2   : > { %v1097_v51 = vsel %vm1095_vm0, %v1092_v16, %v1093_v35  ;;  %v1767_v41 = vadd.f32 %v1735_v12, %v1410_v47  ;;  %v4465_v56 = vrot.slane %v3601_v6, 7  ;;  %v1451_v54 = vrot.slane %v3601_v6, 1 }
 0x1c3   : > { %v1060_v50 = vmul.f32 %v2932_v20, %v3929_v45  ;;  %2405 = vmatprep.mubr.bf16.mxu1 %v1826_v26  ;;  %v1769_v46 = vadd.f32 %v1737_v14, %v1412_v8  ;;  %v1705_v2 = vsel %vm1577_vm4, %v1455_v38, 0.0  ;;  %v1706_v16 = vsel %vm1578_vm5, %v1454_v42, 0.0  ;;  %v2506_v26 = vld [vmem:[%s2871_s17 + $0x10] sm:$0xff] }
 0x1c4   : > { %v1096_v4 = vsel %vm1095_vm0, %v1093_v35, %v4465_v56  ;;  %v1807_v30 = vadd.f32 %v3733_v24, %v1768_v0  ;;  %v1740_v60 = vmul.f32 %v4392_v13, %v1704_v28  ;;  %v1384_v58 = vmul.f32 %v2939_v25, %v1348_v15  ;;  %v4090_v0 = vld [vmem:[%s4248_s6] ss:$0 sm:$0xff] }
 0x1c5   : > { %v1350_v35 = vsel %vm1190_vm6, %v1097_v51, 0.0  ;;  %v1417_v44 = vadd.f32 %v1385_v27, %v1060_v50  ;;  %v1809_v45 = vadd.f32 %v3733_v24, %v1770_v23  ;;  %v1059_v8 = vmul.f32 %v2932_v20, %v3890_v55 }
 0x1c6   : > { %v1351_v43 = vsel %vm1191_vm7, %v1096_v4, 0.0  ;;  %v1806_v29 = vadd.f32 %v3733_v24, %v1767_v41  ;;  %v1414_v21 = vadd.f32 %v1382_v37, %v3804_v7  ;;  %v1453_v19 = vsel %vm1452_vm2, %v1450_v31, %v1451_v54  ;;  %v2508_v4 = vld [vmem:[%s2871_s17 + $0x18] sm:$0xff] }
 0x1c7   : > { %v1808_v53 = vadd.f32 %v3733_v24, %v1769_v46  ;;  %v1741_v3 = vmul.f32 %v4392_v13, %v1705_v2  ;;  %v1742_v48 = vmul.f32 %v4392_v13, %v1706_v16  ;;  %v1386_v36 = vmul.f32 %v2939_v25, %v1350_v35  ;;  %v2509_v2 = vld [vmem:[%s2871_s17 + $0x8] sm:$0xff] }
 0x1c8   : > { %v1827_v32 = vpack.c.bf16 %v1807_v30, %v1806_v29  ;;  %v1739_v55 = vmul.f32 %v4392_v13, %v3982_v10  ;;  %v1772_v61 = vadd.f32 %v1740_v60, %v1415_v18  ;;  %v1416_v5 = vadd.f32 %v1384_v58, %v1059_v8  ;;  %v2510_v58 = vld [vmem:[%s2871_s17 + $0x30] sm:$0xff]  ;;  %v2511_v8 = vld [vmem:[%s2871_s17 + $0x20] sm:$0xff] }
 0x1c9   : > { %vm1580_vm0 = vcmp.lt.s32.totalorder %v4466_v59, 8  ;;  %v1828_v7 = vpack.c.bf16 %v1809_v45, %v1808_v53  ;;  %v1774_v63 = vadd.f32 %v1742_v48, %v1417_v44  ;;  %v1061_v9 = vmul.f32 %v2932_v20, %v3886_v49 }
 0x1ca   : > { %v1387_v31 = vmul.f32 %v2939_v25, %v1351_v43  ;;  %v4467_v40 = vrot.slane %v3149_v22, 1  ;;  %2406 = vmatmul.mubr.bf16.gmra.mxu1 %v1827_v32  ;;  %v1771_v33 = vadd.f32 %v1739_v55, %v1414_v21  ;;  %v1707_v10 = vsel %vm1579_vm8, %v1453_v19, 0.0  ;;  %v2512_v19 = vld [vmem:[%s2871_s17 + $0x38] sm:$0xff] }
 0x1cb   : > { %2409 = vmatprep.mubr.bf16.mxu1 %v1828_v7  ;;  %v1773_v18 = vadd.f32 %v1741_v3, %v1416_v5  ;;  %v1062_v39 = vmul.f32 %v2932_v20, %v3601_v6  ;;  %v1811_v62 = vadd.f32 %v3733_v24, %v1772_v61  ;;  %v1418_v49 = vadd.f32 %v1386_v36, %v1061_v9  ;;  %v2513_v36 = vld [vmem:[%s2871_s17 + $0x28] sm:$0xff]  ;;  %v2514_v5 = vld [vmem:[%s2871_s17 + $0x50] sm:$0xff]  ;;  %v2515_v9 = vld [vmem:[%s2871_s17 + $0x40] sm:$0xff] }
 0x1cc   : > { %v1484_v57 = vsel %vm1452_vm2, %v1451_v54, %v4467_v40  ;;  %v1813_v25 = vadd.f32 %v3733_v24, %v1774_v63  ;;  %v1810_v1 = vadd.f32 %v3733_v24, %v1771_v33  ;;  %v1743_v28 = vmul.f32 %v4392_v13, %v1707_v10  ;;  %v2516_v33 = vld [vmem:[%s2871_s17 + $0x58] sm:$0xff] }
 0x1cd   : > { %v1708_v47 = vsel %vm1580_vm0, %v1484_v57, 0.0  ;;  %v1419_v22 = vadd.f32 %v1387_v31, %v1062_v39  ;;  %v1812_v17 = vadd.f32 %v3733_v24, %v1773_v18 }
 0x1ce   : > { %v1829_v14 = vpack.c.bf16 %v1811_v62, %v1810_v1  ;;  %v1744_v11 = vmul.f32 %v4392_v13, %v1708_v47  ;;  %v1775_v34 = vadd.f32 %v1743_v28, %v1418_v49  ;;  %v2517_v62 = vld [vmem:[%s2871_s17 + $0x48] sm:$0xff] }
 0x1cf   : > { %v1830_v42 = vpack.c.bf16 %v1813_v25, %v1812_v17 }
 0x1d0   : > { %v1776_v20 = vadd.f32 %v1744_v11, %v1419_v22  ;;  %v1814_v6 = vadd.f32 %v3733_v24, %v1775_v34  ;;  %v2518_v22 = vld [vmem:[%s2871_s17 + $0x70] sm:$0xff] }
 0x1d2   : > { %2410 = vmatmul.mubr.bf16.gmra.mxu1 %v1829_v14  ;;  %v1815_v52 = vadd.f32 %v3733_v24, %v1776_v20  ;;  %v2507_v24 = vld [vmem:[%s2871_s17] sm:$0xff]  ;;  %v2520_v20 = vld [vmem:[%s2871_s17 + $0x78] sm:$0xff] }
 0x1d3   : > { %2413 = vmatprep.mubr.bf16.mxu1 %v1830_v42  ;;  %v2519_v14 = vld [vmem:[%s2871_s17 + $0x60] sm:$0xff] }
 0x1d4   : > { %v1831_v12 = vpack.c.bf16 %v1815_v52, %v1814_v6 }
 0x1da   : > { %2414 = vmatmul.mubr.bf16.gmra.mxu1 %v1831_v12 }
 0x25b   : > { %v2387_v13 = vpop.f32.mrf.mxu1 }
 0x25c   : > { %v1946_v27 = vadd.f32 %v2387_v13, %v4090_v0  ;;  %v2521_v13 = vld [vmem:[%s2871_s17 + $0x68] sm:$0xff] }
 0x25d   : > { %v1937_v38 = vpop.f32.mrf.mxu1 }
 0x25e   : > { %v2066_v23 = vadd.f32 %v2506_v26, %v1946_v27  ;;  %v1938_v37 = vadd.f32 %v4090_v0, %v1937_v38 }
 0x25f   : > { %v2388_v15 = vpop.f32.mrf.mxu1 }
 0x260   : > { %2098 = vst [vmem:[%s4097_s10 + $0x10] sm:$0xff] %v2066_v23  ;;  %v2064_v51 = vadd.f32 %v2507_v24, %v1938_v37  ;;  %v1949_v41 = vadd.f32 %v2388_v15, %v4090_v0  ;;  %v2522_v23 = vld [vmem:[%s2871_s17 + $0x90] sm:$0xff] }
 0x261   : > { %v1940_v56 = vpop.f32.mrf.mxu1 }
 0x262   : > { %2096 = vst [vmem:[%s4097_s10] sm:$0xff] %v2064_v51  ;;  %v2067_v54 = vadd.f32 %v2508_v4, %v1949_v41  ;;  %v1941_v50 = vadd.f32 %v4090_v0, %v1940_v56  ;;  %v2523_v51 = vld [vmem:[%s2871_s17 + $0x80] sm:$0xff] }
 0x264   : > { %2099 = vst [vmem:[%s4097_s10 + $0x18] sm:$0xff] %v2067_v54  ;;  %v2065_v16 = vadd.f32 %v2509_v2, %v1941_v50  ;;  %v2524_v54 = vld [vmem:[%s2871_s17 + $0x98] sm:$0xff] }
 0x265   : > { %v2391_v46 = vpop.f32.mrf.mxu1 }
 0x266   : > { %v1962_v30 = vadd.f32 %v2391_v46, %v4090_v0  ;;  %2097 = vst [vmem:[%s4097_s10 + $0x8] sm:$0xff] %v2065_v16  ;;  %v2525_v16 = vld [vmem:[%s2871_s17 + $0x88] sm:$0xff] }
 0x267   : > { %v1953_v60 = vpop.f32.mrf.mxu1 }
 0x268   : > { %v2070_v35 = vadd.f32 %v2510_v58, %v1962_v30  ;;  %v1954_v44 = vadd.f32 %v4090_v0, %v1953_v60 }
 0x269   : > { %v2392_v45 = vpop.f32.mrf.mxu1 }
 0x26a   : > { %2102 = vst [vmem:[%s4097_s10 + $0x30] sm:$0xff] %v2070_v35  ;;  %v2068_v43 = vadd.f32 %v2511_v8, %v1954_v44  ;;  %v1965_v29 = vadd.f32 %v2392_v45, %v4090_v0  ;;  %v2526_v35 = vld [vmem:[%s2871_s17 + $0xb0] sm:$0xff] }
 0x26b   : > { %v1956_v21 = vpop.f32.mrf.mxu1 }
 0x26c   : > { %2100 = vst [vmem:[%s4097_s10 + $0x20] sm:$0xff] %v2068_v43  ;;  %v2071_v53 = vadd.f32 %v2512_v19, %v1965_v29  ;;  %v1957_v3 = vadd.f32 %v4090_v0, %v1956_v21  ;;  %v2527_v43 = vld [vmem:[%s2871_s17 + $0xa0] sm:$0xff] }
 0x26e   : > { %2103 = vst [vmem:[%s4097_s10 + $0x38] sm:$0xff] %v2071_v53  ;;  %v2069_v32 = vadd.f32 %v2513_v36, %v1957_v3  ;;  %v2528_v53 = vld [vmem:[%s2871_s17 + $0xb8] sm:$0xff] }
 0x26f   : > { %v2395_v48 = vpop.f32.mrf.mxu1 }
 0x270   : > { %v1978_v55 = vadd.f32 %v2395_v48, %v4090_v0  ;;  %2101 = vst [vmem:[%s4097_s10 + $0x28] sm:$0xff] %v2069_v32  ;;  %v2529_v32 = vld [vmem:[%s2871_s17 + $0xa8] sm:$0xff] }
 0x271   : > { %v1969_v61 = vpop.f32.mrf.mxu1 }
 0x272   : > { %v2074_v59 = vadd.f32 %v2514_v5, %v1978_v55  ;;  %v1970_v7 = vadd.f32 %v4090_v0, %v1969_v61 }
 0x273   : > { %v2396_v63 = vpop.f32.mrf.mxu1 }
 0x274   : > { %2106 = vst [vmem:[%s4097_s10 + $0x50] sm:$0xff] %v2074_v59  ;;  %v2072_v31 = vadd.f32 %v2515_v9, %v1970_v7  ;;  %v1981_v40 = vadd.f32 %v2396_v63, %v4090_v0  ;;  %v2530_v59 = vld [vmem:[%s2871_s17 + $0xd0] sm:$0xff] }
 0x275   : > { %v1972_v57 = vpop.f32.mrf.mxu1 }
 0x276   : > { %2104 = vst [vmem:[%s4097_s10 + $0x40] sm:$0xff] %v2072_v31  ;;  %v2075_v10 = vadd.f32 %v2516_v33, %v1981_v40  ;;  %v1973_v18 = vadd.f32 %v4090_v0, %v1972_v57  ;;  %v2531_v31 = vld [vmem:[%s2871_s17 + $0xc0] sm:$0xff] }
 0x278   : > { %v2399_v39 = vpop.f32.mrf.mxu1  ;;  %2107 = vst [vmem:[%s4097_s10 + $0x58] sm:$0xff] %v2075_v10  ;;  %v2073_v49 = vadd.f32 %v2517_v62, %v1973_v18  ;;  %v2532_v10 = vld [vmem:[%s2871_s17 + $0xd8] sm:$0xff] }
 0x279   : > { %v1994_v47 = vadd.f32 %v2399_v39, %v4090_v0 }
 0x27a   : > { %v1985_v25 = vpop.f32.mrf.mxu1  ;;  %2105 = vst [vmem:[%s4097_s10 + $0x48] sm:$0xff] %v2073_v49  ;;  %v2533_v49 = vld [vmem:[%s2871_s17 + $0xc8] sm:$0xff] }
 0x27b   : > { %v2078_v1 = vadd.f32 %v2518_v22, %v1994_v47  ;;  %v1986_v28 = vadd.f32 %v4090_v0, %v1985_v25 }
 0x27c   : > { %v2400_v17 = vpop.f32.mrf.mxu1 }
 0x27d   : > { %2110 = vst [vmem:[%s4097_s10 + $0x70] sm:$0xff] %v2078_v1  ;;  %v2076_v11 = vadd.f32 %v2519_v14, %v1986_v28  ;;  %v1997_v34 = vadd.f32 %v2400_v17, %v4090_v0  ;;  %v2534_v1 = vld [vmem:[%s2871_s17 + $0xf0] sm:$0xff] }
 0x27e   : > { %v1988_v42 = vpop.f32.mrf.mxu1 }
 0x27f   : > { %2108 = vst [vmem:[%s4097_s10 + $0x60] sm:$0xff] %v2076_v11  ;;  %v2079_v6 = vadd.f32 %v2520_v20, %v1997_v34  ;;  %v1989_v52 = vadd.f32 %v4090_v0, %v1988_v42  ;;  %v2535_v11 = vld [vmem:[%s2871_s17 + $0xe0] sm:$0xff] }
 0x281   : > { %v2403_v12 = vpop.f32.mrf.mxu1  ;;  %2111 = vst [vmem:[%s4097_s10 + $0x78] sm:$0xff] %v2079_v6  ;;  %v2077_v27 = vadd.f32 %v2521_v13, %v1989_v52  ;;  %v2536_v6 = vld [vmem:[%s2871_s17 + $0xf8] sm:$0xff]  ;;  %v2537_v13 = vld [vmem:[%s2871_s17 + $0xe8] sm:$0xff] }
 0x282   : > { %v2010_v38 = vadd.f32 %v2403_v12, %v4090_v0 }
 0x283   : > { %v2001_v26 = vpop.f32.mrf.mxu1  ;;  %2109 = vst [vmem:[%s4097_s10 + $0x68] sm:$0xff] %v2077_v27 }
 0x284   : > { %v2082_v37 = vadd.f32 %v2522_v23, %v2010_v38  ;;  %v2002_v15 = vadd.f32 %v4090_v0, %v2001_v26 }
 0x285   : > { %v2404_v24 = vpop.f32.mrf.mxu1 }
 0x286   : > { %2114 = vst [vmem:[%s4097_s10 + $0x90] sm:$0xff] %v2082_v37  ;;  %v2080_v41 = vadd.f32 %v2523_v51, %v2002_v15  ;;  %v2013_v56 = vadd.f32 %v2404_v24, %v4090_v0 }
 0x287   : > { %v2004_v4 = vpop.f32.mrf.mxu1 }
 0x288   : > { %2112 = vst [vmem:[%s4097_s10 + $0x80] sm:$0xff] %v2080_v41  ;;  %v2083_v50 = vadd.f32 %v2524_v54, %v2013_v56  ;;  %v2005_v46 = vadd.f32 %v4090_v0, %v2004_v4 }
 0x28a   : > { %v2407_v2 = vpop.f32.mrf.mxu1  ;;  %2115 = vst [vmem:[%s4097_s10 + $0x98] sm:$0xff] %v2083_v50  ;;  %v2081_v30 = vadd.f32 %v2525_v16, %v2005_v46 }
 0x28b   : > { %v2026_v60 = vadd.f32 %v2407_v2, %v4090_v0 }
 0x28c   : > { %v2017_v58 = vpop.f32.mrf.mxu1  ;;  %2113 = vst [vmem:[%s4097_s10 + $0x88] sm:$0xff] %v2081_v30 }
 0x28d   : > { %v2086_v44 = vadd.f32 %v2526_v35, %v2026_v60  ;;  %v2018_v45 = vadd.f32 %v4090_v0, %v2017_v58 }
 0x28e   : > { %v2408_v8 = vpop.f32.mrf.mxu1 }
 0x28f   : > { %2118 = vst [vmem:[%s4097_s10 + $0xb0] sm:$0xff] %v2086_v44  ;;  %v2084_v29 = vadd.f32 %v2527_v43, %v2018_v45  ;;  %v2029_v21 = vadd.f32 %v2408_v8, %v4090_v0 }
 0x290   : > { %v2020_v19 = vpop.f32.mrf.mxu1 }
 0x291   : > { %2116 = vst [vmem:[%s4097_s10 + $0xa0] sm:$0xff] %v2084_v29  ;;  %v2087_v3 = vadd.f32 %v2528_v53, %v2029_v21  ;;  %v2021_v48 = vadd.f32 %v4090_v0, %v2020_v19 }
 0x292   : > { %v2411_v36 = vpop.f32.mrf.mxu1 }
 0x293   : > { %2119 = vst [vmem:[%s4097_s10 + $0xb8] sm:$0xff] %v2087_v3  ;;  %v2085_v55 = vadd.f32 %v2529_v32, %v2021_v48  ;;  %v2042_v61 = vadd.f32 %v2411_v36, %v4090_v0 }
 0x294   : > { %v2033_v5 = vpop.f32.mrf.mxu1 }
 0x295   : > { %2117 = vst [vmem:[%s4097_s10 + $0xa8] sm:$0xff] %v2085_v55  ;;  %v2090_v7 = vadd.f32 %v2530_v59, %v2042_v61  ;;  %v2034_v63 = vadd.f32 %v4090_v0, %v2033_v5 }
 0x296   : > { %v2412_v9 = vpop.f32.mrf.mxu1 }
 0x297   : > { %2122 = vst [vmem:[%s4097_s10 + $0xd0] sm:$0xff] %v2090_v7  ;;  %v2088_v40 = vadd.f32 %v2531_v31, %v2034_v63  ;;  %v2045_v57 = vadd.f32 %v2412_v9, %v4090_v0 }
 0x298   : > { %v2036_v33 = vpop.f32.mrf.mxu1 }
 0x299   : > { %2120 = vst [vmem:[%s4097_s10 + $0xc0] sm:$0xff] %v2088_v40  ;;  %v2091_v18 = vadd.f32 %v2532_v10, %v2045_v57  ;;  %v2037_v39 = vadd.f32 %v4090_v0, %v2036_v33 }
 0x29a   : > { %v2415_v62 = vpop.f32.mrf.mxu1 }
 0x29b   : > { %2123 = vst [vmem:[%s4097_s10 + $0xd8] sm:$0xff] %v2091_v18  ;;  %v2089_v47 = vadd.f32 %v2533_v49, %v2037_v39  ;;  %v2058_v25 = vadd.f32 %v2415_v62, %v4090_v0 }
 0x29c   : > { %v2049_v22 = vpop.f32.mrf.mxu1 }
 0x29d   : > { %2121 = vst [vmem:[%s4097_s10 + $0xc8] sm:$0xff] %v2089_v47  ;;  %v2094_v28 = vadd.f32 %v2534_v1, %v2058_v25  ;;  %v2050_v17 = vadd.f32 %v4090_v0, %v2049_v22 }
 0x29e   : > { %v2416_v14 = vpop.f32.mrf.mxu1 }
 0x29f   : > { %2126 = vst [vmem:[%s4097_s10 + $0xf0] sm:$0xff] %v2094_v28  ;;  %v2092_v34 = vadd.f32 %v2535_v11, %v2050_v17  ;;  %v2061_v42 = vadd.f32 %v2416_v14, %v4090_v0 }
 0x2a0   : > { %v2052_v20 = vpop.f32.mrf.mxu1 }
 0x2a1   : > { %2124 = vst [vmem:[%s4097_s10 + $0xe0] sm:$0xff] %v2092_v34  ;;  %v2095_v52 = vadd.f32 %v2536_v6, %v2061_v42  ;;  %v2053_v12 = vadd.f32 %v4090_v0, %v2052_v20 }
 0x2a3   : > { %2127 = vst [vmem:[%s4097_s10 + $0xf8] sm:$0xff] %v2095_v52  ;;  %v2093_v27 = vadd.f32 %v2537_v13, %v2053_v12 }
 0x2a5   : > { %2125 = vst [vmem:[%s4097_s10 + $0xe8] sm:$0xff] %v2093_v27 }
 0x2a6   : > { %2631 = shalt.err (!%p2628_p9)
}
 0x2a7   : > { %s2632_s17 = scalar_lea.hbm %s4194_s30, 4096  ;;  %s2636_s19 = scalar_lea.hbm %s4249_s7, 8192 }
 0x2a8   : > { %p2633_p13 = scmp.ne.s32.totalorder %s4194_s30, %s2632_s17  ;;  %p2637_p4 = scmp.lt.s32.totalorder %s4194_s30, %s4249_s7 }
 0x2a9   : > { %p2638_p8 = scmp.lt.s32.totalorder %s2636_s19, %s2632_s17 }
 0x2aa   : > { %p2634_p5 = pnand %p2633_p13, %p4468_p10 }
 0x2ab   : > { %p2639_p3 = por %p2638_p8, %p2637_p4 }
 0x2ac   : > { %p2635_p0 = pneg %p2634_p5 }
 0x2ae   : > { %p2640_p11 = pnand %p2639_p3, %p2635_p0 }
 0x2b0   : > { %2643 = shalt.err (!%p2640_p11)
}
 0x2b1   : > { %s2696_s1 = smov 128   ;;  %s2697_s16 = smov 8  }
 0x2b2   : > { %2427 = dma.vmem_to_hbm [thread:$0]  (%p4468_p10), %s4196_s14, 4096, %s4194_s30, %s2129_s28, %s2696_s1, %s2696_s1, %s2697_s16  }
 0x2b3 PF: > { %s2157_s9 = sand.u32 1, %s2674_s24   ;;  %p4469_p1 = scmp.ne.s32.totalorder %s4306_s8, 0 }
 0x2b4   : > { %p4470_p2 = scmp.ge.s32.totalorder %s2686_s27, 2  ;;  %s2158_s18 = scalar_lea.sflag [#allocation4], %s2157_s9 }
 0x2b6   : > { %p2441_p6 = pnand %p4470_p2, %p4469_p1 }
 0x2b8   : > { %p2442_p12 = pneg %p2441_p6 }
 0x2ba   : > { %2669 = dma.done.wait (%p2442_p12), %s2158_s18, 4096  }
 0x2bb   : > { %2671 = vsyncadd (%p2442_p12), %s2158_s18, 4294963200  ;;  %p21_p7 = scmp.ge.s32.totalorder %s2810_s23, 4   ;;  %s4471_s24 = smov %s2678_s25 }
 0x2bc   : > { %s4472_s25 = smov %s2682_s26  ;;  %s4473_s26 = smov %s2826_s12 }
 0x2bd   : > { %s4474_s27 = smov %s2810_s23  ;;  %23 = sbr.rel (!%p21_p7) target bundleno = 8 (0x8), region = 101 }
 0x2c2   :  { %2163 = vsyncpa [#allocation3], 1 }
 0x2c3   :  { %2165 = vsyncpa [#allocation3 + $0x1], 1 }
 0x2c4   :  { %2166 = vsyncpa [#allocation6], 1 }
 0x2c5   :  { %2167 = vsyncpa [#allocation4], 1 }
 0x2c6   :  { %2169 = vsyncpa [#allocation4 + $0x1], 1 }

</bundles_post_ra>
